<compile_context>
chip_gen: v7x
topology: tpu7x:2x2x1
jax: 0.10.0
libtpu: 0.0.40
codegen_flags: <defaults>
</compile_context>

<pallas_src>
from functools import partial

import numpy as np
import jax
import jax.numpy as jnp
from jax.experimental import pallas as pl
from jax.experimental.pallas import tpu as pltpu

CHAR_EMBEDDING_DIM = 6
HIDDEN1_DIM = 6
WORD_EMBEDDING_DIM = 6
HIDDEN2_DIM = 12

# ---- packed-weight blob layout (BLOB_ROWS x 512 lanes, f32) --------------------------------
GATE_PAD = 128                      # each LSTM gate padded to its own 128-lane block
GATE_LANES = 4 * GATE_PAD           # 512
KPAD = 16                           # K padding for input-projection / combine / tag weights
K8 = 8                              # K padding for the small (H1=6) recurrent / hidden slices
WPAD = 8                            # word axis padded to one full sublane tile
NEG_INF = -1e30

R_WIH1 = 0                          # (16, 512)  char-LSTM input projection   (rows 0..5 real)
R_WHH1 = 16                         # ( 8, 512)  char-LSTM recurrent          (rows 0..5 real)
R_WIH2 = 24                         # (16, 512)  combine-LSTM input: rows 0..5 word-emb,
                                    #            rows 8..13 char-hidden, rest zero
R_WHH2 = 40                         # (16, 512)  combine-LSTM recurrent       (rows 0..11 real)
R_WTAG = 56                         # (16, 512)  tag Linear (rows 0..11, lanes 0..T-1 real)
R_BIAS = 72                         # row 72 = b1, 73 = b2, 74 = b_tag (pad tag lanes = -1e30)
BLOB_ROWS = 80


def _sigmoid(z):
    # single-EUP sigmoid: 0.5*tanh(z/2)+0.5 (no exact-divide Newton sequence on the chain)
    return 0.5 * jnp.tanh(0.5 * z) + 0.5


def lstm_tagger_kernel(in_ref, blob_ref, out_ref, *, W, Cmax):
    G = GATE_PAD
    R_WEMB = Cmax * WPAD
    R_LENS = R_WEMB + WPAD

    b1 = blob_ref[R_BIAS + 0:R_BIAS + 1, :]                       # (1, 4G)
    b2 = blob_ref[R_BIAS + 1:R_BIAS + 2, :]                       # (1, 4G)
    b_tag = blob_ref[R_BIAS + 2:R_BIAS + 3, :G]                   # (1, G), pad lanes = -1e30

    # ragged-word step masks, hoisted out of the unrolled char loop (one broadcast total)
    lens_b = jnp.broadcast_to(in_ref[R_LENS:R_LENS + WPAD, 0:1], (WPAD, G))
    masks = [lens_b > float(t) for t in range(Cmax)]

    # ---- char LSTM: input projection for ALL (t, word) pairs in one matmul -----------------
    xp1 = jnp.dot(in_ref[0:R_WEMB, :], blob_ref[R_WIH1:R_WIH1 + KPAD, :],
                  preferred_element_type=jnp.float32) + b1        # (Cmax*8, 4G), time-major

    h1 = jnp.zeros((WPAD, G), jnp.float32)
    c1 = jnp.zeros((WPAD, G), jnp.float32)
    for t in range(Cmax):                                         # only h1 @ W_hh1 on the chain
        gates = xp1[t * WPAD:(t + 1) * WPAD, :] + jnp.dot(
            h1[:, :K8], blob_ref[R_WHH1:R_WHH1 + K8, :],
            preferred_element_type=jnp.float32)
        sig = _sigmoid(gates[:, :3 * G])                          # [i | f | o], aligned slices
        i = sig[:, 0:G]
        f = sig[:, G:2 * G]
        o = sig[:, 2 * G:3 * G]
        g = jnp.tanh(gates[:, 3 * G:])
        c_new = f * c1 + i * g
        h_new = o * jnp.tanh(c_new)
        h1 = jnp.where(masks[t], h_new, h1)                       # ragged-word valid-step mask
        c1 = jnp.where(masks[t], c_new, c1)

    # ---- combine LSTM: fused K=16 input projection; only h2 @ W_hh2 inside the word loop ---
    x2 = jnp.concatenate([in_ref[R_WEMB:R_WEMB + WPAD, :K8], h1[:, :K8]], axis=1)  # (8, 16)
    base = jnp.dot(x2, blob_ref[R_WIH2:R_WIH2 + KPAD, :],
                   preferred_element_type=jnp.float32) + b2       # (8, 4G)

    h2 = jnp.zeros((1, G), jnp.float32)
    c2 = jnp.zeros((1, G), jnp.float32)
    h2s = jnp.zeros((WPAD, G), jnp.float32)                       # register-resident (1 vreg)
    row_ids = jax.lax.broadcasted_iota(jnp.int32, (WPAD, G), 0)
    for w in range(W):                                            # sequential over real words
        gates = base[w:w + 1, :] + jnp.dot(
            h2[:, :KPAD], blob_ref[R_WHH2:R_WHH2 + KPAD, :],
            preferred_element_type=jnp.float32)
        sig = _sigmoid(gates[:, :3 * G])
        i = sig[:, 0:G]
        f = sig[:, G:2 * G]
        o = sig[:, 2 * G:3 * G]
        g = jnp.tanh(gates[:, 3 * G:])
        c2 = f * c2 + i * g
        h2 = o * jnp.tanh(c2)
        h2s = jnp.where(row_ids == w, h2, h2s)                    # stash row w (sublane select)

    # ---- tag Linear (single N=128 matmul) + lane-dense log_softmax -------------------------
    logits = jnp.dot(h2s[:, :KPAD], blob_ref[R_WTAG:R_WTAG + KPAD, :G],
                     preferred_element_type=jnp.float32) + b_tag  # (8, 128); pad lanes ~ -1e30
    mx = jnp.max(logits, axis=1, keepdims=True)
    unnorm = logits - mx
    lse = jnp.log(jnp.sum(jnp.exp(unnorm), axis=1, keepdims=True))
    out_ref[...] = unnorm - lse                                   # unmasked lane-dense store


# ------------------------------- host-side weight packing -----------------------------------
def _pack_gate_weight(w_pt, H, rows):
    """(4H, in) PyTorch LSTM weight ([i,f,g,o] chunks) -> (rows, 512) with gate order
    [i,f,o,g]; each gate's H real columns start on a 128-lane boundary, padding is zero."""
    w_t = jnp.asarray(w_pt, jnp.float32).T
    packed = jnp.concatenate(
        [jnp.pad(w_t[:, s * H:(s + 1) * H], ((0, 0), (0, GATE_PAD - H)))
         for s in (0, 1, 3, 2)], axis=1)
    return jnp.pad(packed, ((0, rows - packed.shape[0]), (0, 0)))


def _pack_gate_bias(b, H):
    return jnp.concatenate(
        [jnp.pad(b[s * H:(s + 1) * H], (0, GATE_PAD - H)) for s in (0, 1, 3, 2)])


def pack_params(p):
    """All weights/biases -> one f32 (80, 512) blob; pack ONCE, keep device-resident."""
    T = p['b_tag'].shape[0]
    b_tag_row = jnp.concatenate([
        p['b_tag'].astype(jnp.float32),
        jnp.full((GATE_PAD - T,), NEG_INF, jnp.float32),          # mask pad tag lanes for lse
        jnp.zeros((GATE_LANES - GATE_PAD,), jnp.float32),
    ])
    bias_rows = jnp.pad(jnp.stack([
        _pack_gate_bias(p['b_ih1'] + p['b_hh1'], HIDDEN1_DIM),
        _pack_gate_bias(p['b_ih2'] + p['b_hh2'], HIDDEN2_DIM),
        b_tag_row,
    ], axis=0), ((0, 5), (0, 0)))                                 # -> 8 rows
    w_tag = jnp.pad(p['w_tag'].T, ((0, KPAD - HIDDEN2_DIM), (0, GATE_LANES - T)))
    blob = jnp.concatenate([
        _pack_gate_weight(p['w_ih1'], HIDDEN1_DIM, KPAD),                           # R_WIH1
        _pack_gate_weight(p['w_hh1'], HIDDEN1_DIM, K8),                             # R_WHH1
        _pack_gate_weight(p['w_ih2'][:, :WORD_EMBEDDING_DIM], HIDDEN2_DIM, K8),     # R_WIH2
        _pack_gate_weight(p['w_ih2'][:, WORD_EMBEDDING_DIM:], HIDDEN2_DIM, K8),     #   (+8)
        _pack_gate_weight(p['w_hh2'], HIDDEN2_DIM, KPAD),                           # R_WHH2
        w_tag,                                                                      # R_WTAG
        bias_rows,                                                                  # R_BIAS
    ], axis=0)
    assert blob.shape == (BLOB_ROWS, GATE_LANES)
    return blob


@partial(jax.jit, static_argnames=('n_tags',))
def lstm_tagger_forward(char_ids, char_lens, word_ids, char_embed, word_embed, blob, *,
                        n_tags):
    """char_ids: (W, Cmax) int32 (0-padded), char_lens: (W,) int32, word_ids: (W,) int32."""
    W, Cmax = char_ids.shape
    assert W <= WPAD

    # Embedding gathers stay in plain JAX glue (data-dependent gather).
    cemb = jnp.take(char_embed, char_ids, axis=0)                 # (W, Cmax, E1)
    cemb_tm = jnp.pad(jnp.swapaxes(cemb, 0, 1),                   # time-major, 8-row blocks
                      ((0, 0), (0, WPAD - W), (0, KPAD - CHAR_EMBEDDING_DIM)))
    cemb_rows = cemb_tm.reshape(Cmax * WPAD, KPAD)
    wemb_rows = jnp.pad(jnp.take(word_embed, word_ids, axis=0),
                        ((0, WPAD - W), (0, KPAD - WORD_EMBEDDING_DIM)))
    lens_rows = jnp.pad(char_lens.astype(jnp.float32).reshape(W, 1),
                        ((0, WPAD - W), (0, KPAD - 1)))
    merged = jnp.concatenate([cemb_rows, wemb_rows, lens_rows], axis=0)  # (Cmax*8+16, 16)

    out = pl.pallas_call(
        partial(lstm_tagger_kernel, W=W, Cmax=Cmax),
        out_shape=jax.ShapeDtypeStruct((WPAD, GATE_PAD), jnp.float32),
        in_specs=[pl.BlockSpec(memory_space=pltpu.MemorySpace.VMEM)] * 2,
        out_specs=pl.BlockSpec(memory_space=pltpu.MemorySpace.VMEM),
    )(merged, blob)
    return out[:W, :n_tags]


# ------------------------------------ params & reference ------------------------------------
def init_params(key, char_size, vocab_size, tag_size):
    ks = jax.random.split(key, 12)

    def u(k, shape, scale):
        return jax.random.uniform(k, shape, jnp.float32, -scale, scale)

    s1 = 1.0 / np.sqrt(HIDDEN1_DIM)
    s2 = 1.0 / np.sqrt(HIDDEN2_DIM)
    return {
        'char_embed': jax.random.normal(ks[0], (char_size, CHAR_EMBEDDING_DIM), jnp.float32),
        'word_embed': jax.random.normal(ks[1], (vocab_size, WORD_EMBEDDING_DIM), jnp.float32),
        'w_ih1': u(ks[2], (4 * HIDDEN1_DIM, CHAR_EMBEDDING_DIM), s1),
        'w_hh1': u(ks[3], (4 * HIDDEN1_DIM, HIDDEN1_DIM), s1),
        'b_ih1': u(ks[4], (4 * HIDDEN1_DIM,), s1),
        'b_hh1': u(ks[5], (4 * HIDDEN1_DIM,), s1),
        'w_ih2': u(ks[6], (4 * HIDDEN2_DIM, WORD_EMBEDDING_DIM + HIDDEN1_DIM), s2),
        'w_hh2': u(ks[7], (4 * HIDDEN2_DIM, HIDDEN2_DIM), s2),
        'b_ih2': u(ks[8], (4 * HIDDEN2_DIM,), s2),
        'b_hh2': u(ks[9], (4 * HIDDEN2_DIM,), s2),
        'w_tag': u(ks[10], (tag_size, HIDDEN2_DIM), s2),
        'b_tag': u(ks[11], (tag_size,), s2),
    }


def ref_forward(char_ids_list, word_ids, params):
    """Pure NumPy reference mirroring LSTMTagger.forward exactly (PyTorch [i,f,g,o] order)."""
    p = {k: np.asarray(v, dtype=np.float64) for k, v in params.items()}

    def sigmoid(x):
        return 1.0 / (1.0 + np.exp(-x))

    def cell(x, h, c, w_ih, w_hh, b_ih, b_hh):
        H = h.shape[-1]
        g = x @ w_ih.T + h @ w_hh.T + b_ih + b_hh
        i = sigmoid(g[:H]); f = sigmoid(g[H:2 * H])
        gg = np.tanh(g[2 * H:3 * H]); o = sigmoid(g[3 * H:4 * H])
        c = f * c + i * gg
        h = o * np.tanh(c)
        return h, c

    tags = []
    h2 = np.zeros(HIDDEN2_DIM); c2 = np.zeros(HIDDEN2_DIM)
    for w_idx, chars in zip(word_ids, char_ids_list):
        h1 = np.zeros(HIDDEN1_DIM); c1 = np.zeros(HIDDEN1_DIM)
        for cid in chars:
            x = p['char_embed'][cid]
            h1, c1 = cell(x, h1, c1, p['w_ih1'], p['w_hh1'], p['b_ih1'], p['b_hh1'])
        x2 = np.concatenate([p['word_embed'][int(w_idx)], h1])
        h2, c2 = cell(x2, h2, c2, p['w_ih2'], p['w_hh2'], p['b_ih2'], p['b_hh2'])
        tags.append(p['w_tag'] @ h2 + p['b_tag'])
    logits = np.stack(tags, axis=0)
    m = logits.max(axis=1, keepdims=True)
    lse = m + np.log(np.exp(logits - m).sum(axis=1, keepdims=True))
    return logits - lse


if __name__ == "__main__":
    training_data = [("The dog ate the apple".split(), ['DET', 'NN', 'V', 'DET', 'NN']),
                     ("Everybody read that book".split(), ['NN', 'V', 'DET', 'NN'])]
    word_to_ix, char_to_ix = {}, {}
    for sent, _tags in training_data:
        for w in sent:
            word_to_ix.setdefault(w, len(word_to_ix))
            for c in w:
                char_to_ix.setdefault(c, len(char_to_ix))
    tag_to_ix = {'DET': 0, 'NN': 1, 'V': 2}

    sentence = training_data[0][0]                      # ['The','dog','ate','the','apple']
    word_ids = np.array([word_to_ix[w] for w in sentence], dtype=np.int32)
    char_ids_list = [[char_to_ix[c] for c in w] for w in sentence]
    Wn = len(sentence)
    Cmax = max(len(cs) for cs in char_ids_list)
    char_ids = np.zeros((Wn, Cmax), dtype=np.int32)
    char_lens = np.zeros((Wn,), dtype=np.int32)
    for i, cs in enumerate(char_ids_list):
        char_ids[i, :len(cs)] = np.array(cs, dtype=np.int32)
        char_lens[i] = len(cs)

    params = init_params(jax.random.PRNGKey(0),
                         len(char_to_ix), len(word_to_ix), len(tag_to_ix))
    blob = jax.block_until_ready(pack_params(params))   # packed ONCE, device-resident

    tag_scores = lstm_tagger_forward(jnp.asarray(char_ids),
                                     jnp.asarray(char_lens),
                                     jnp.asarray(word_ids),
                                     params['char_embed'],
                                     params['word_embed'],
                                     blob,
                                     n_tags=len(tag_to_ix))
    tag_scores = jax.block_until_ready(tag_scores)

    ref = ref_forward(char_ids_list, word_ids, params)
    np.testing.assert_allclose(np.asarray(tag_scores), ref, rtol=2e-4, atol=2e-5)
    print("KERNEL_OK")
</pallas_src>

<mosaic_0001>
module attributes {stable_mosaic.version = 11 : i64} {
  func.func @lstm_tagger_kernel(%arg0: memref<56x16xf32, #tpu.memory_space<vmem>>, %arg1: memref<80x512xf32, #tpu.memory_space<vmem>>, %arg2: memref<8x128xf32, #tpu.memory_space<vmem>>) attributes {dimension_semantics = [], scalar_prefetch = 0 : i64, scratch_operands = 0 : i64, tpu.core_type = #tpu.core_type<tc>} {
    %c72 = arith.constant 72 : index
    %c0 = arith.constant 0 : index
    %0 = vector.load %arg1[%c72, %c0] : memref<80x512xf32, #tpu.memory_space<vmem>>, vector<1x512xf32>
    %c73 = arith.constant 73 : index
    %c0_0 = arith.constant 0 : index
    %1 = vector.load %arg1[%c73, %c0_0] : memref<80x512xf32, #tpu.memory_space<vmem>>, vector<1x512xf32>
    %c74 = arith.constant 74 : index
    %c0_1 = arith.constant 0 : index
    %2 = vector.load %arg1[%c74, %c0_1] : memref<80x512xf32, #tpu.memory_space<vmem>>, vector<1x128xf32>
    %c48 = arith.constant 48 : index
    %c0_2 = arith.constant 0 : index
    %3 = vector.load %arg0[%c48, %c0_2] : memref<56x16xf32, #tpu.memory_space<vmem>>, vector<8x1xf32>
    %4 = vector.shape_cast %3 : vector<8x1xf32> to vector<8x1xf32>
    %5 = vector.broadcast %4 : vector<8x1xf32> to vector<8x128xf32>
    %cst = arith.constant 0.000000e+00 : f32
    %6 = vector.broadcast %cst : f32 to vector<8x128xf32>
    %7 = arith.cmpf ogt, %5, %6 : vector<8x128xf32>
    %cst_3 = arith.constant 1.000000e+00 : f32
    %8 = vector.broadcast %cst_3 : f32 to vector<8x128xf32>
    %9 = arith.cmpf ogt, %5, %8 : vector<8x128xf32>
    %cst_4 = arith.constant 2.000000e+00 : f32
    %10 = vector.broadcast %cst_4 : f32 to vector<8x128xf32>
    %11 = arith.cmpf ogt, %5, %10 : vector<8x128xf32>
    %cst_5 = arith.constant 3.000000e+00 : f32
    %12 = vector.broadcast %cst_5 : f32 to vector<8x128xf32>
    %13 = arith.cmpf ogt, %5, %12 : vector<8x128xf32>
    %cst_6 = arith.constant 4.000000e+00 : f32
    %14 = vector.broadcast %cst_6 : f32 to vector<8x128xf32>
    %15 = arith.cmpf ogt, %5, %14 : vector<8x128xf32>
    %c0_7 = arith.constant 0 : index
    %c0_8 = arith.constant 0 : index
    %16 = vector.load %arg0[%c0_7, %c0_8] : memref<56x16xf32, #tpu.memory_space<vmem>>, vector<40x16xf32>
    %c0_9 = arith.constant 0 : index
    %c0_10 = arith.constant 0 : index
    %17 = vector.load %arg1[%c0_9, %c0_10] : memref<80x512xf32, #tpu.memory_space<vmem>>, vector<16x512xf32>
    %cst_11 = arith.constant dense<0.000000e+00> : vector<40x512xf32>
    %18 = tpu.matmul %16, %17, %cst_11 {dimension_numbers = #tpu.dot_dimension_numbers<[1], [0], [0], [1], [0, 0, 1, 1], [], []>} : vector<40x16xf32>, vector<16x512xf32>, vector<40x512xf32> -> vector<40x512xf32>
    %19 = vector.broadcast %0 : vector<1x512xf32> to vector<40x512xf32>
    %20 = arith.addf %18, %19 : vector<40x512xf32>
    %cst_12 = arith.constant 0.000000e+00 : f32
    %21 = vector.broadcast %cst_12 : f32 to vector<8x128xf32>
    %cst_13 = arith.constant 0.000000e+00 : f32
    %22 = vector.broadcast %cst_13 : f32 to vector<8x128xf32>
    %23 = vector.extract_strided_slice %20 {offsets = [0, 0], sizes = [8, 512], strides = [1, 1]} : vector<40x512xf32> to vector<8x512xf32>
    %24 = vector.extract_strided_slice %21 {offsets = [0, 0], sizes = [8, 8], strides = [1, 1]} : vector<8x128xf32> to vector<8x8xf32>
    %c16 = arith.constant 16 : index
    %c0_14 = arith.constant 0 : index
    %25 = vector.load %arg1[%c16, %c0_14] : memref<80x512xf32, #tpu.memory_space<vmem>>, vector<8x512xf32>
    %cst_15 = arith.constant dense<0.000000e+00> : vector<8x512xf32>
    %26 = tpu.matmul %24, %25, %cst_15 {dimension_numbers = #tpu.dot_dimension_numbers<[1], [0], [0], [1], [0, 0, 1, 1], [], []>} : vector<8x8xf32>, vector<8x512xf32>, vector<8x512xf32> -> vector<8x512xf32>
    %27 = arith.addf %23, %26 : vector<8x512xf32>
    %28 = vector.extract_strided_slice %27 {offsets = [0, 0], sizes = [8, 384], strides = [1, 1]} : vector<8x512xf32> to vector<8x384xf32>
    %cst_16 = arith.constant 5.000000e-01 : f32
    %29 = vector.broadcast %cst_16 : f32 to vector<8x384xf32>
    %30 = arith.mulf %29, %28 : vector<8x384xf32>
    %31 = math.tanh %30 : vector<8x384xf32>
    %cst_17 = arith.constant 5.000000e-01 : f32
    %32 = vector.broadcast %cst_17 : f32 to vector<8x384xf32>
    %33 = arith.mulf %32, %31 : vector<8x384xf32>
    %cst_18 = arith.constant 5.000000e-01 : f32
    %34 = vector.broadcast %cst_18 : f32 to vector<8x384xf32>
    %35 = arith.addf %33, %34 : vector<8x384xf32>
    %36 = vector.extract_strided_slice %35 {offsets = [0, 0], sizes = [8, 128], strides = [1, 1]} : vector<8x384xf32> to vector<8x128xf32>
    %37 = vector.extract_strided_slice %35 {offsets = [0, 128], sizes = [8, 128], strides = [1, 1]} : vector<8x384xf32> to vector<8x128xf32>
    %38 = vector.extract_strided_slice %35 {offsets = [0, 256], sizes = [8, 128], strides = [1, 1]} : vector<8x384xf32> to vector<8x128xf32>
    %39 = vector.extract_strided_slice %27 {offsets = [0, 384], sizes = [8, 128], strides = [1, 1]} : vector<8x512xf32> to vector<8x128xf32>
    %40 = math.tanh %39 : vector<8x128xf32>
    %41 = arith.mulf %37, %22 : vector<8x128xf32>
    %42 = arith.mulf %36, %40 : vector<8x128xf32>
    %43 = arith.addf %41, %42 : vector<8x128xf32>
    %44 = math.tanh %43 : vector<8x128xf32>
    %45 = arith.mulf %38, %44 : vector<8x128xf32>
    %46 = arith.select %7, %45, %21 : vector<8x128xi1>, vector<8x128xf32>
    %47 = arith.select %7, %43, %22 : vector<8x128xi1>, vector<8x128xf32>
    %48 = vector.extract_strided_slice %20 {offsets = [8, 0], sizes = [8, 512], strides = [1, 1]} : vector<40x512xf32> to vector<8x512xf32>
    %49 = vector.extract_strided_slice %46 {offsets = [0, 0], sizes = [8, 8], strides = [1, 1]} : vector<8x128xf32> to vector<8x8xf32>
    %c16_19 = arith.constant 16 : index
    %c0_20 = arith.constant 0 : index
    %50 = vector.load %arg1[%c16_19, %c0_20] : memref<80x512xf32, #tpu.memory_space<vmem>>, vector<8x512xf32>
    %cst_21 = arith.constant dense<0.000000e+00> : vector<8x512xf32>
    %51 = tpu.matmul %49, %50, %cst_21 {dimension_numbers = #tpu.dot_dimension_numbers<[1], [0], [0], [1], [0, 0, 1, 1], [], []>} : vector<8x8xf32>, vector<8x512xf32>, vector<8x512xf32> -> vector<8x512xf32>
    %52 = arith.addf %48, %51 : vector<8x512xf32>
    %53 = vector.extract_strided_slice %52 {offsets = [0, 0], sizes = [8, 384], strides = [1, 1]} : vector<8x512xf32> to vector<8x384xf32>
    %cst_22 = arith.constant 5.000000e-01 : f32
    %54 = vector.broadcast %cst_22 : f32 to vector<8x384xf32>
    %55 = arith.mulf %54, %53 : vector<8x384xf32>
    %56 = math.tanh %55 : vector<8x384xf32>
    %cst_23 = arith.constant 5.000000e-01 : f32
    %57 = vector.broadcast %cst_23 : f32 to vector<8x384xf32>
    %58 = arith.mulf %57, %56 : vector<8x384xf32>
    %cst_24 = arith.constant 5.000000e-01 : f32
    %59 = vector.broadcast %cst_24 : f32 to vector<8x384xf32>
    %60 = arith.addf %58, %59 : vector<8x384xf32>
    %61 = vector.extract_strided_slice %60 {offsets = [0, 0], sizes = [8, 128], strides = [1, 1]} : vector<8x384xf32> to vector<8x128xf32>
    %62 = vector.extract_strided_slice %60 {offsets = [0, 128], sizes = [8, 128], strides = [1, 1]} : vector<8x384xf32> to vector<8x128xf32>
    %63 = vector.extract_strided_slice %60 {offsets = [0, 256], sizes = [8, 128], strides = [1, 1]} : vector<8x384xf32> to vector<8x128xf32>
    %64 = vector.extract_strided_slice %52 {offsets = [0, 384], sizes = [8, 128], strides = [1, 1]} : vector<8x512xf32> to vector<8x128xf32>
    %65 = math.tanh %64 : vector<8x128xf32>
    %66 = arith.mulf %62, %47 : vector<8x128xf32>
    %67 = arith.mulf %61, %65 : vector<8x128xf32>
    %68 = arith.addf %66, %67 : vector<8x128xf32>
    %69 = math.tanh %68 : vector<8x128xf32>
    %70 = arith.mulf %63, %69 : vector<8x128xf32>
    %71 = arith.select %9, %70, %46 : vector<8x128xi1>, vector<8x128xf32>
    %72 = arith.select %9, %68, %47 : vector<8x128xi1>, vector<8x128xf32>
    %73 = vector.extract_strided_slice %20 {offsets = [16, 0], sizes = [8, 512], strides = [1, 1]} : vector<40x512xf32> to vector<8x512xf32>
    %74 = vector.extract_strided_slice %71 {offsets = [0, 0], sizes = [8, 8], strides = [1, 1]} : vector<8x128xf32> to vector<8x8xf32>
    %c16_25 = arith.constant 16 : index
    %c0_26 = arith.constant 0 : index
    %75 = vector.load %arg1[%c16_25, %c0_26] : memref<80x512xf32, #tpu.memory_space<vmem>>, vector<8x512xf32>
    %cst_27 = arith.constant dense<0.000000e+00> : vector<8x512xf32>
    %76 = tpu.matmul %74, %75, %cst_27 {dimension_numbers = #tpu.dot_dimension_numbers<[1], [0], [0], [1], [0, 0, 1, 1], [], []>} : vector<8x8xf32>, vector<8x512xf32>, vector<8x512xf32> -> vector<8x512xf32>
    %77 = arith.addf %73, %76 : vector<8x512xf32>
    %78 = vector.extract_strided_slice %77 {offsets = [0, 0], sizes = [8, 384], strides = [1, 1]} : vector<8x512xf32> to vector<8x384xf32>
    %cst_28 = arith.constant 5.000000e-01 : f32
    %79 = vector.broadcast %cst_28 : f32 to vector<8x384xf32>
    %80 = arith.mulf %79, %78 : vector<8x384xf32>
    %81 = math.tanh %80 : vector<8x384xf32>
    %cst_29 = arith.constant 5.000000e-01 : f32
    %82 = vector.broadcast %cst_29 : f32 to vector<8x384xf32>
    %83 = arith.mulf %82, %81 : vector<8x384xf32>
    %cst_30 = arith.constant 5.000000e-01 : f32
    %84 = vector.broadcast %cst_30 : f32 to vector<8x384xf32>
    %85 = arith.addf %83, %84 : vector<8x384xf32>
    %86 = vector.extract_strided_slice %85 {offsets = [0, 0], sizes = [8, 128], strides = [1, 1]} : vector<8x384xf32> to vector<8x128xf32>
    %87 = vector.extract_strided_slice %85 {offsets = [0, 128], sizes = [8, 128], strides = [1, 1]} : vector<8x384xf32> to vector<8x128xf32>
    %88 = vector.extract_strided_slice %85 {offsets = [0, 256], sizes = [8, 128], strides = [1, 1]} : vector<8x384xf32> to vector<8x128xf32>
    %89 = vector.extract_strided_slice %77 {offsets = [0, 384], sizes = [8, 128], strides = [1, 1]} : vector<8x512xf32> to vector<8x128xf32>
    %90 = math.tanh %89 : vector<8x128xf32>
    %91 = arith.mulf %87, %72 : vector<8x128xf32>
    %92 = arith.mulf %86, %90 : vector<8x128xf32>
    %93 = arith.addf %91, %92 : vector<8x128xf32>
    %94 = math.tanh %93 : vector<8x128xf32>
    %95 = arith.mulf %88, %94 : vector<8x128xf32>
    %96 = arith.select %11, %95, %71 : vector<8x128xi1>, vector<8x128xf32>
    %97 = arith.select %11, %93, %72 : vector<8x128xi1>, vector<8x128xf32>
    %98 = vector.extract_strided_slice %20 {offsets = [24, 0], sizes = [8, 512], strides = [1, 1]} : vector<40x512xf32> to vector<8x512xf32>
    %99 = vector.extract_strided_slice %96 {offsets = [0, 0], sizes = [8, 8], strides = [1, 1]} : vector<8x128xf32> to vector<8x8xf32>
    %c16_31 = arith.constant 16 : index
    %c0_32 = arith.constant 0 : index
    %100 = vector.load %arg1[%c16_31, %c0_32] : memref<80x512xf32, #tpu.memory_space<vmem>>, vector<8x512xf32>
    %cst_33 = arith.constant dense<0.000000e+00> : vector<8x512xf32>
    %101 = tpu.matmul %99, %100, %cst_33 {dimension_numbers = #tpu.dot_dimension_numbers<[1], [0], [0], [1], [0, 0, 1, 1], [], []>} : vector<8x8xf32>, vector<8x512xf32>, vector<8x512xf32> -> vector<8x512xf32>
    %102 = arith.addf %98, %101 : vector<8x512xf32>
    %103 = vector.extract_strided_slice %102 {offsets = [0, 0], sizes = [8, 384], strides = [1, 1]} : vector<8x512xf32> to vector<8x384xf32>
    %cst_34 = arith.constant 5.000000e-01 : f32
    %104 = vector.broadcast %cst_34 : f32 to vector<8x384xf32>
    %105 = arith.mulf %104, %103 : vector<8x384xf32>
    %106 = math.tanh %105 : vector<8x384xf32>
    %cst_35 = arith.constant 5.000000e-01 : f32
    %107 = vector.broadcast %cst_35 : f32 to vector<8x384xf32>
    %108 = arith.mulf %107, %106 : vector<8x384xf32>
    %cst_36 = arith.constant 5.000000e-01 : f32
    %109 = vector.broadcast %cst_36 : f32 to vector<8x384xf32>
    %110 = arith.addf %108, %109 : vector<8x384xf32>
    %111 = vector.extract_strided_slice %110 {offsets = [0, 0], sizes = [8, 128], strides = [1, 1]} : vector<8x384xf32> to vector<8x128xf32>
    %112 = vector.extract_strided_slice %110 {offsets = [0, 128], sizes = [8, 128], strides = [1, 1]} : vector<8x384xf32> to vector<8x128xf32>
    %113 = vector.extract_strided_slice %110 {offsets = [0, 256], sizes = [8, 128], strides = [1, 1]} : vector<8x384xf32> to vector<8x128xf32>
    %114 = vector.extract_strided_slice %102 {offsets = [0, 384], sizes = [8, 128], strides = [1, 1]} : vector<8x512xf32> to vector<8x128xf32>
    %115 = math.tanh %114 : vector<8x128xf32>
    %116 = arith.mulf %112, %97 : vector<8x128xf32>
    %117 = arith.mulf %111, %115 : vector<8x128xf32>
    %118 = arith.addf %116, %117 : vector<8x128xf32>
    %119 = math.tanh %118 : vector<8x128xf32>
    %120 = arith.mulf %113, %119 : vector<8x128xf32>
    %121 = arith.select %13, %120, %96 : vector<8x128xi1>, vector<8x128xf32>
    %122 = arith.select %13, %118, %97 : vector<8x128xi1>, vector<8x128xf32>
    %123 = vector.extract_strided_slice %20 {offsets = [32, 0], sizes = [8, 512], strides = [1, 1]} : vector<40x512xf32> to vector<8x512xf32>
    %124 = vector.extract_strided_slice %121 {offsets = [0, 0], sizes = [8, 8], strides = [1, 1]} : vector<8x128xf32> to vector<8x8xf32>
    %c16_37 = arith.constant 16 : index
    %c0_38 = arith.constant 0 : index
    %125 = vector.load %arg1[%c16_37, %c0_38] : memref<80x512xf32, #tpu.memory_space<vmem>>, vector<8x512xf32>
    %cst_39 = arith.constant dense<0.000000e+00> : vector<8x512xf32>
    %126 = tpu.matmul %124, %125, %cst_39 {dimension_numbers = #tpu.dot_dimension_numbers<[1], [0], [0], [1], [0, 0, 1, 1], [], []>} : vector<8x8xf32>, vector<8x512xf32>, vector<8x512xf32> -> vector<8x512xf32>
    %127 = arith.addf %123, %126 : vector<8x512xf32>
    %128 = vector.extract_strided_slice %127 {offsets = [0, 0], sizes = [8, 384], strides = [1, 1]} : vector<8x512xf32> to vector<8x384xf32>
    %cst_40 = arith.constant 5.000000e-01 : f32
    %129 = vector.broadcast %cst_40 : f32 to vector<8x384xf32>
    %130 = arith.mulf %129, %128 : vector<8x384xf32>
    %131 = math.tanh %130 : vector<8x384xf32>
    %cst_41 = arith.constant 5.000000e-01 : f32
    %132 = vector.broadcast %cst_41 : f32 to vector<8x384xf32>
    %133 = arith.mulf %132, %131 : vector<8x384xf32>
    %cst_42 = arith.constant 5.000000e-01 : f32
    %134 = vector.broadcast %cst_42 : f32 to vector<8x384xf32>
    %135 = arith.addf %133, %134 : vector<8x384xf32>
    %136 = vector.extract_strided_slice %135 {offsets = [0, 0], sizes = [8, 128], strides = [1, 1]} : vector<8x384xf32> to vector<8x128xf32>
    %137 = vector.extract_strided_slice %135 {offsets = [0, 128], sizes = [8, 128], strides = [1, 1]} : vector<8x384xf32> to vector<8x128xf32>
    %138 = vector.extract_strided_slice %135 {offsets = [0, 256], sizes = [8, 128], strides = [1, 1]} : vector<8x384xf32> to vector<8x128xf32>
    %139 = vector.extract_strided_slice %127 {offsets = [0, 384], sizes = [8, 128], strides = [1, 1]} : vector<8x512xf32> to vector<8x128xf32>
    %140 = math.tanh %139 : vector<8x128xf32>
    %141 = arith.mulf %137, %122 : vector<8x128xf32>
    %142 = arith.mulf %136, %140 : vector<8x128xf32>
    %143 = arith.addf %141, %142 : vector<8x128xf32>
    %144 = math.tanh %143 : vector<8x128xf32>
    %145 = arith.mulf %138, %144 : vector<8x128xf32>
    %146 = arith.select %15, %145, %121 : vector<8x128xi1>, vector<8x128xf32>
    %c40 = arith.constant 40 : index
    %c0_43 = arith.constant 0 : index
    %147 = vector.load %arg0[%c40, %c0_43] : memref<56x16xf32, #tpu.memory_space<vmem>>, vector<8x8xf32>
    %148 = vector.extract_strided_slice %146 {offsets = [0, 0], sizes = [8, 8], strides = [1, 1]} : vector<8x128xf32> to vector<8x8xf32>
    %149 = tpu.concatenate %147, %148 in 1 : vector<8x8xf32>, vector<8x8xf32> -> vector<8x16xf32>
    %c24 = arith.constant 24 : index
    %c0_44 = arith.constant 0 : index
    %150 = vector.load %arg1[%c24, %c0_44] : memref<80x512xf32, #tpu.memory_space<vmem>>, vector<16x512xf32>
    %cst_45 = arith.constant dense<0.000000e+00> : vector<8x512xf32>
    %151 = tpu.matmul %149, %150, %cst_45 {dimension_numbers = #tpu.dot_dimension_numbers<[1], [0], [0], [1], [0, 0, 1, 1], [], []>} : vector<8x16xf32>, vector<16x512xf32>, vector<8x512xf32> -> vector<8x512xf32>
    %152 = vector.broadcast %1 : vector<1x512xf32> to vector<8x512xf32>
    %153 = arith.addf %151, %152 : vector<8x512xf32>
    %cst_46 = arith.constant 0.000000e+00 : f32
    %154 = vector.broadcast %cst_46 : f32 to vector<1x128xf32>
    %cst_47 = arith.constant 0.000000e+00 : f32
    %155 = vector.broadcast %cst_47 : f32 to vector<1x128xf32>
    %cst_48 = arith.constant 0.000000e+00 : f32
    %156 = vector.broadcast %cst_48 : f32 to vector<8x128xf32>
    %157 = tpu.iota {dimensions = array<i32: 0>} : vector<8x128xi32>
    %158 = vector.extract_strided_slice %153 {offsets = [0, 0], sizes = [1, 512], strides = [1, 1]} : vector<8x512xf32> to vector<1x512xf32>
    %159 = vector.extract_strided_slice %154 {offsets = [0, 0], sizes = [1, 16], strides = [1, 1]} : vector<1x128xf32> to vector<1x16xf32>
    %c40_49 = arith.constant 40 : index
    %c0_50 = arith.constant 0 : index
    %160 = vector.load %arg1[%c40_49, %c0_50] : memref<80x512xf32, #tpu.memory_space<vmem>>, vector<16x512xf32>
    %cst_51 = arith.constant dense<0.000000e+00> : vector<1x512xf32>
    %161 = tpu.matmul %159, %160, %cst_51 {dimension_numbers = #tpu.dot_dimension_numbers<[1], [0], [0], [1], [0, 0, 1, 1], [], []>} : vector<1x16xf32>, vector<16x512xf32>, vector<1x512xf32> -> vector<1x512xf32>
    %162 = arith.addf %158, %161 : vector<1x512xf32>
    %163 = vector.extract_strided_slice %162 {offsets = [0, 0], sizes = [1, 384], strides = [1, 1]} : vector<1x512xf32> to vector<1x384xf32>
    %cst_52 = arith.constant 5.000000e-01 : f32
    %164 = vector.broadcast %cst_52 : f32 to vector<1x384xf32>
    %165 = arith.mulf %164, %163 : vector<1x384xf32>
    %166 = math.tanh %165 : vector<1x384xf32>
    %cst_53 = arith.constant 5.000000e-01 : f32
    %167 = vector.broadcast %cst_53 : f32 to vector<1x384xf32>
    %168 = arith.mulf %167, %166 : vector<1x384xf32>
    %cst_54 = arith.constant 5.000000e-01 : f32
    %169 = vector.broadcast %cst_54 : f32 to vector<1x384xf32>
    %170 = arith.addf %168, %169 : vector<1x384xf32>
    %171 = vector.extract_strided_slice %170 {offsets = [0, 0], sizes = [1, 128], strides = [1, 1]} : vector<1x384xf32> to vector<1x128xf32>
    %172 = vector.extract_strided_slice %170 {offsets = [0, 128], sizes = [1, 128], strides = [1, 1]} : vector<1x384xf32> to vector<1x128xf32>
    %173 = vector.extract_strided_slice %170 {offsets = [0, 256], sizes = [1, 128], strides = [1, 1]} : vector<1x384xf32> to vector<1x128xf32>
    %174 = vector.extract_strided_slice %162 {offsets = [0, 384], sizes = [1, 128], strides = [1, 1]} : vector<1x512xf32> to vector<1x128xf32>
    %175 = math.tanh %174 : vector<1x128xf32>
    %176 = arith.mulf %172, %155 : vector<1x128xf32>
    %177 = arith.mulf %171, %175 : vector<1x128xf32>
    %178 = arith.addf %176, %177 : vector<1x128xf32>
    %179 = math.tanh %178 : vector<1x128xf32>
    %180 = arith.mulf %173, %179 : vector<1x128xf32>
    %c0_i32 = arith.constant 0 : i32
    %181 = vector.broadcast %c0_i32 : i32 to vector<8x128xi32>
    %182 = arith.cmpi eq, %157, %181 : vector<8x128xi32>
    %183 = vector.shape_cast %180 : vector<1x128xf32> to vector<1x128xf32>
    %184 = vector.broadcast %183 : vector<1x128xf32> to vector<8x128xf32>
    %185 = arith.select %182, %184, %156 : vector<8x128xi1>, vector<8x128xf32>
    %186 = vector.extract_strided_slice %153 {offsets = [1, 0], sizes = [1, 512], strides = [1, 1]} : vector<8x512xf32> to vector<1x512xf32>
    %187 = vector.extract_strided_slice %180 {offsets = [0, 0], sizes = [1, 16], strides = [1, 1]} : vector<1x128xf32> to vector<1x16xf32>
    %c40_55 = arith.constant 40 : index
    %c0_56 = arith.constant 0 : index
    %188 = vector.load %arg1[%c40_55, %c0_56] : memref<80x512xf32, #tpu.memory_space<vmem>>, vector<16x512xf32>
    %cst_57 = arith.constant dense<0.000000e+00> : vector<1x512xf32>
    %189 = tpu.matmul %187, %188, %cst_57 {dimension_numbers = #tpu.dot_dimension_numbers<[1], [0], [0], [1], [0, 0, 1, 1], [], []>} : vector<1x16xf32>, vector<16x512xf32>, vector<1x512xf32> -> vector<1x512xf32>
    %190 = arith.addf %186, %189 : vector<1x512xf32>
    %191 = vector.extract_strided_slice %190 {offsets = [0, 0], sizes = [1, 384], strides = [1, 1]} : vector<1x512xf32> to vector<1x384xf32>
    %cst_58 = arith.constant 5.000000e-01 : f32
    %192 = vector.broadcast %cst_58 : f32 to vector<1x384xf32>
    %193 = arith.mulf %192, %191 : vector<1x384xf32>
    %194 = math.tanh %193 : vector<1x384xf32>
    %cst_59 = arith.constant 5.000000e-01 : f32
    %195 = vector.broadcast %cst_59 : f32 to vector<1x384xf32>
    %196 = arith.mulf %195, %194 : vector<1x384xf32>
    %cst_60 = arith.constant 5.000000e-01 : f32
    %197 = vector.broadcast %cst_60 : f32 to vector<1x384xf32>
    %198 = arith.addf %196, %197 : vector<1x384xf32>
    %199 = vector.extract_strided_slice %198 {offsets = [0, 0], sizes = [1, 128], strides = [1, 1]} : vector<1x384xf32> to vector<1x128xf32>
    %200 = vector.extract_strided_slice %198 {offsets = [0, 128], sizes = [1, 128], strides = [1, 1]} : vector<1x384xf32> to vector<1x128xf32>
    %201 = vector.extract_strided_slice %198 {offsets = [0, 256], sizes = [1, 128], strides = [1, 1]} : vector<1x384xf32> to vector<1x128xf32>
    %202 = vector.extract_strided_slice %190 {offsets = [0, 384], sizes = [1, 128], strides = [1, 1]} : vector<1x512xf32> to vector<1x128xf32>
    %203 = math.tanh %202 : vector<1x128xf32>
    %204 = arith.mulf %200, %178 : vector<1x128xf32>
    %205 = arith.mulf %199, %203 : vector<1x128xf32>
    %206 = arith.addf %204, %205 : vector<1x128xf32>
    %207 = math.tanh %206 : vector<1x128xf32>
    %208 = arith.mulf %201, %207 : vector<1x128xf32>
    %c1_i32 = arith.constant 1 : i32
    %209 = vector.broadcast %c1_i32 : i32 to vector<8x128xi32>
    %210 = arith.cmpi eq, %157, %209 : vector<8x128xi32>
    %211 = vector.shape_cast %208 : vector<1x128xf32> to vector<1x128xf32>
    %212 = vector.broadcast %211 : vector<1x128xf32> to vector<8x128xf32>
    %213 = arith.select %210, %212, %185 : vector<8x128xi1>, vector<8x128xf32>
    %214 = vector.extract_strided_slice %153 {offsets = [2, 0], sizes = [1, 512], strides = [1, 1]} : vector<8x512xf32> to vector<1x512xf32>
    %215 = vector.extract_strided_slice %208 {offsets = [0, 0], sizes = [1, 16], strides = [1, 1]} : vector<1x128xf32> to vector<1x16xf32>
    %c40_61 = arith.constant 40 : index
    %c0_62 = arith.constant 0 : index
    %216 = vector.load %arg1[%c40_61, %c0_62] : memref<80x512xf32, #tpu.memory_space<vmem>>, vector<16x512xf32>
    %cst_63 = arith.constant dense<0.000000e+00> : vector<1x512xf32>
    %217 = tpu.matmul %215, %216, %cst_63 {dimension_numbers = #tpu.dot_dimension_numbers<[1], [0], [0], [1], [0, 0, 1, 1], [], []>} : vector<1x16xf32>, vector<16x512xf32>, vector<1x512xf32> -> vector<1x512xf32>
    %218 = arith.addf %214, %217 : vector<1x512xf32>
    %219 = vector.extract_strided_slice %218 {offsets = [0, 0], sizes = [1, 384], strides = [1, 1]} : vector<1x512xf32> to vector<1x384xf32>
    %cst_64 = arith.constant 5.000000e-01 : f32
    %220 = vector.broadcast %cst_64 : f32 to vector<1x384xf32>
    %221 = arith.mulf %220, %219 : vector<1x384xf32>
    %222 = math.tanh %221 : vector<1x384xf32>
    %cst_65 = arith.constant 5.000000e-01 : f32
    %223 = vector.broadcast %cst_65 : f32 to vector<1x384xf32>
    %224 = arith.mulf %223, %222 : vector<1x384xf32>
    %cst_66 = arith.constant 5.000000e-01 : f32
    %225 = vector.broadcast %cst_66 : f32 to vector<1x384xf32>
    %226 = arith.addf %224, %225 : vector<1x384xf32>
    %227 = vector.extract_strided_slice %226 {offsets = [0, 0], sizes = [1, 128], strides = [1, 1]} : vector<1x384xf32> to vector<1x128xf32>
    %228 = vector.extract_strided_slice %226 {offsets = [0, 128], sizes = [1, 128], strides = [1, 1]} : vector<1x384xf32> to vector<1x128xf32>
    %229 = vector.extract_strided_slice %226 {offsets = [0, 256], sizes = [1, 128], strides = [1, 1]} : vector<1x384xf32> to vector<1x128xf32>
    %230 = vector.extract_strided_slice %218 {offsets = [0, 384], sizes = [1, 128], strides = [1, 1]} : vector<1x512xf32> to vector<1x128xf32>
    %231 = math.tanh %230 : vector<1x128xf32>
    %232 = arith.mulf %228, %206 : vector<1x128xf32>
    %233 = arith.mulf %227, %231 : vector<1x128xf32>
    %234 = arith.addf %232, %233 : vector<1x128xf32>
    %235 = math.tanh %234 : vector<1x128xf32>
    %236 = arith.mulf %229, %235 : vector<1x128xf32>
    %c2_i32 = arith.constant 2 : i32
    %237 = vector.broadcast %c2_i32 : i32 to vector<8x128xi32>
    %238 = arith.cmpi eq, %157, %237 : vector<8x128xi32>
    %239 = vector.shape_cast %236 : vector<1x128xf32> to vector<1x128xf32>
    %240 = vector.broadcast %239 : vector<1x128xf32> to vector<8x128xf32>
    %241 = arith.select %238, %240, %213 : vector<8x128xi1>, vector<8x128xf32>
    %242 = vector.extract_strided_slice %153 {offsets = [3, 0], sizes = [1, 512], strides = [1, 1]} : vector<8x512xf32> to vector<1x512xf32>
    %243 = vector.extract_strided_slice %236 {offsets = [0, 0], sizes = [1, 16], strides = [1, 1]} : vector<1x128xf32> to vector<1x16xf32>
    %c40_67 = arith.constant 40 : index
    %c0_68 = arith.constant 0 : index
    %244 = vector.load %arg1[%c40_67, %c0_68] : memref<80x512xf32, #tpu.memory_space<vmem>>, vector<16x512xf32>
    %cst_69 = arith.constant dense<0.000000e+00> : vector<1x512xf32>
    %245 = tpu.matmul %243, %244, %cst_69 {dimension_numbers = #tpu.dot_dimension_numbers<[1], [0], [0], [1], [0, 0, 1, 1], [], []>} : vector<1x16xf32>, vector<16x512xf32>, vector<1x512xf32> -> vector<1x512xf32>
    %246 = arith.addf %242, %245 : vector<1x512xf32>
    %247 = vector.extract_strided_slice %246 {offsets = [0, 0], sizes = [1, 384], strides = [1, 1]} : vector<1x512xf32> to vector<1x384xf32>
    %cst_70 = arith.constant 5.000000e-01 : f32
    %248 = vector.broadcast %cst_70 : f32 to vector<1x384xf32>
    %249 = arith.mulf %248, %247 : vector<1x384xf32>
    %250 = math.tanh %249 : vector<1x384xf32>
    %cst_71 = arith.constant 5.000000e-01 : f32
    %251 = vector.broadcast %cst_71 : f32 to vector<1x384xf32>
    %252 = arith.mulf %251, %250 : vector<1x384xf32>
    %cst_72 = arith.constant 5.000000e-01 : f32
    %253 = vector.broadcast %cst_72 : f32 to vector<1x384xf32>
    %254 = arith.addf %252, %253 : vector<1x384xf32>
    %255 = vector.extract_strided_slice %254 {offsets = [0, 0], sizes = [1, 128], strides = [1, 1]} : vector<1x384xf32> to vector<1x128xf32>
    %256 = vector.extract_strided_slice %254 {offsets = [0, 128], sizes = [1, 128], strides = [1, 1]} : vector<1x384xf32> to vector<1x128xf32>
    %257 = vector.extract_strided_slice %254 {offsets = [0, 256], sizes = [1, 128], strides = [1, 1]} : vector<1x384xf32> to vector<1x128xf32>
    %258 = vector.extract_strided_slice %246 {offsets = [0, 384], sizes = [1, 128], strides = [1, 1]} : vector<1x512xf32> to vector<1x128xf32>
    %259 = math.tanh %258 : vector<1x128xf32>
    %260 = arith.mulf %256, %234 : vector<1x128xf32>
    %261 = arith.mulf %255, %259 : vector<1x128xf32>
    %262 = arith.addf %260, %261 : vector<1x128xf32>
    %263 = math.tanh %262 : vector<1x128xf32>
    %264 = arith.mulf %257, %263 : vector<1x128xf32>
    %c3_i32 = arith.constant 3 : i32
    %265 = vector.broadcast %c3_i32 : i32 to vector<8x128xi32>
    %266 = arith.cmpi eq, %157, %265 : vector<8x128xi32>
    %267 = vector.shape_cast %264 : vector<1x128xf32> to vector<1x128xf32>
    %268 = vector.broadcast %267 : vector<1x128xf32> to vector<8x128xf32>
    %269 = arith.select %266, %268, %241 : vector<8x128xi1>, vector<8x128xf32>
    %270 = vector.extract_strided_slice %153 {offsets = [4, 0], sizes = [1, 512], strides = [1, 1]} : vector<8x512xf32> to vector<1x512xf32>
    %271 = vector.extract_strided_slice %264 {offsets = [0, 0], sizes = [1, 16], strides = [1, 1]} : vector<1x128xf32> to vector<1x16xf32>
    %c40_73 = arith.constant 40 : index
    %c0_74 = arith.constant 0 : index
    %272 = vector.load %arg1[%c40_73, %c0_74] : memref<80x512xf32, #tpu.memory_space<vmem>>, vector<16x512xf32>
    %cst_75 = arith.constant dense<0.000000e+00> : vector<1x512xf32>
    %273 = tpu.matmul %271, %272, %cst_75 {dimension_numbers = #tpu.dot_dimension_numbers<[1], [0], [0], [1], [0, 0, 1, 1], [], []>} : vector<1x16xf32>, vector<16x512xf32>, vector<1x512xf32> -> vector<1x512xf32>
    %274 = arith.addf %270, %273 : vector<1x512xf32>
    %275 = vector.extract_strided_slice %274 {offsets = [0, 0], sizes = [1, 384], strides = [1, 1]} : vector<1x512xf32> to vector<1x384xf32>
    %cst_76 = arith.constant 5.000000e-01 : f32
    %276 = vector.broadcast %cst_76 : f32 to vector<1x384xf32>
    %277 = arith.mulf %276, %275 : vector<1x384xf32>
    %278 = math.tanh %277 : vector<1x384xf32>
    %cst_77 = arith.constant 5.000000e-01 : f32
    %279 = vector.broadcast %cst_77 : f32 to vector<1x384xf32>
    %280 = arith.mulf %279, %278 : vector<1x384xf32>
    %cst_78 = arith.constant 5.000000e-01 : f32
    %281 = vector.broadcast %cst_78 : f32 to vector<1x384xf32>
    %282 = arith.addf %280, %281 : vector<1x384xf32>
    %283 = vector.extract_strided_slice %282 {offsets = [0, 0], sizes = [1, 128], strides = [1, 1]} : vector<1x384xf32> to vector<1x128xf32>
    %284 = vector.extract_strided_slice %282 {offsets = [0, 128], sizes = [1, 128], strides = [1, 1]} : vector<1x384xf32> to vector<1x128xf32>
    %285 = vector.extract_strided_slice %282 {offsets = [0, 256], sizes = [1, 128], strides = [1, 1]} : vector<1x384xf32> to vector<1x128xf32>
    %286 = vector.extract_strided_slice %274 {offsets = [0, 384], sizes = [1, 128], strides = [1, 1]} : vector<1x512xf32> to vector<1x128xf32>
    %287 = math.tanh %286 : vector<1x128xf32>
    %288 = arith.mulf %284, %262 : vector<1x128xf32>
    %289 = arith.mulf %283, %287 : vector<1x128xf32>
    %290 = arith.addf %288, %289 : vector<1x128xf32>
    %291 = math.tanh %290 : vector<1x128xf32>
    %292 = arith.mulf %285, %291 : vector<1x128xf32>
    %c4_i32 = arith.constant 4 : i32
    %293 = vector.broadcast %c4_i32 : i32 to vector<8x128xi32>
    %294 = arith.cmpi eq, %157, %293 : vector<8x128xi32>
    %295 = vector.shape_cast %292 : vector<1x128xf32> to vector<1x128xf32>
    %296 = vector.broadcast %295 : vector<1x128xf32> to vector<8x128xf32>
    %297 = arith.select %294, %296, %269 : vector<8x128xi1>, vector<8x128xf32>
    %298 = vector.extract_strided_slice %297 {offsets = [0, 0], sizes = [8, 16], strides = [1, 1]} : vector<8x128xf32> to vector<8x16xf32>
    %c56 = arith.constant 56 : index
    %c0_79 = arith.constant 0 : index
    %299 = vector.load %arg1[%c56, %c0_79] : memref<80x512xf32, #tpu.memory_space<vmem>>, vector<16x128xf32>
    %cst_80 = arith.constant dense<0.000000e+00> : vector<8x128xf32>
    %300 = tpu.matmul %298, %299, %cst_80 {dimension_numbers = #tpu.dot_dimension_numbers<[1], [0], [0], [1], [0, 0, 1, 1], [], []>} : vector<8x16xf32>, vector<16x128xf32>, vector<8x128xf32> -> vector<8x128xf32>
    %301 = vector.broadcast %2 : vector<1x128xf32> to vector<8x128xf32>
    %302 = arith.addf %300, %301 : vector<8x128xf32>
    %cst_81 = arith.constant dense<0xFF800000> : vector<8xf32>
    %303 = vector.multi_reduction <maximumf>, %302, %cst_81 [1] : vector<8x128xf32> to vector<8xf32>
    %304 = vector.shape_cast %303 : vector<8xf32> to vector<8x1xf32>
    %305 = vector.broadcast %304 : vector<8x1xf32> to vector<8x128xf32>
    %306 = arith.subf %302, %305 : vector<8x128xf32>
    %307 = math.exp %306 : vector<8x128xf32>
    %cst_82 = arith.constant dense<0.000000e+00> : vector<8xf32>
    %308 = vector.multi_reduction <add>, %307, %cst_82 [1] : vector<8x128xf32> to vector<8xf32>
    %309 = vector.shape_cast %308 : vector<8xf32> to vector<8x1xf32>
    %310 = math.log %309 : vector<8x1xf32>
    %311 = vector.broadcast %310 : vector<8x1xf32> to vector<8x128xf32>
    %312 = arith.subf %306, %311 : vector<8x128xf32>
    %c0_83 = arith.constant 0 : index
    %c0_84 = arith.constant 0 : index
    %313 = vector.load %arg2[%c0_83, %c0_84] : memref<8x128xf32, #tpu.memory_space<vmem>>, vector<8x128xf32>
    tpu.vector_store %arg2[%c0_83, %c0_84], %312 {strides = array<i32>} : memref<8x128xf32, #tpu.memory_space<vmem>>, vector<8x128xf32>,
    return
  }
}

</mosaic_0001>

<bundles_post_ra>
// kernel: lstm_tagger_forward.1
= control target key start
LH: loop header
LB: loop body
LE: loop exit
PB: predicated region body
PF: predicated region fallthrough
CT: control target
= control target key end

     0   :  { %v2573_v3 = vmov 0.0   ;;  %v2574_v8 = vmov 0   ;;  %vm61_vm0 = vcmask 130048   ;;  %v41_v24 = vlaneseq  ;;  %s2575_s15 = smov 8   ;;  %s2934_s1 = inlined_call_operand.vmem [shape: f32[80,512], index: 1, kind: input, shape index: {}]   ;;  %s2935_s0 = inlined_call_operand.vmem [shape: f32[56,16], index: 0, kind: input, shape index: {}]   ;;  %s2936_s2 = inlined_call_operand.vmem [shape: f32[8,128], index: 2, kind: output, shape index: {}]  }
   0x1   :  { %v33_v0 = vld [vmem:[%s2934_s1 + $0x8] sm:$0xff]  ;;  %v35_v2 = vld [vmem:[%s2934_s1 + $0x18] sm:$0xff]  ;;  %141 = vmatprep.mubr.f32.mxu0 %v2573_v3  ;;  %236 = vmatprep.mubr.f32.mxu1 %v2573_v3  ;;  %v32_v6 = vld [vmem:[%s2934_s1] sm:$0xff]  ;;  %vm271_vm2 = vcmask 64512   ;;  %vm2577_vm11 = vmmov 0  }
   0x2   :  { %v37_v1 = vld [vmem:[%s2934_s1 + $0x28] sm:$0xff]  ;;  %v39_v5 = vld [vmem:[%s2934_s1 + $0x38] sm:$0xff]  ;;  %v36_v7 = vld [vmem:[%s2934_s1 + $0x20] sm:$0xff]  ;;  %2468 = vset.pattern.permute.xlu0 %v2574_v8  ;;  %v2691_v25 = vshrl.u32 %v41_v24, 7 }
   0x3   :  { %v2364_v4 = vpack.c.bf16 %v37_v1, %v33_v0  ;;  %v2368_v9 = vpack.c.bf16 %v39_v5, %v35_v2  ;;  %v2366_v10 = vpack.c.bf16 %v36_v7, %v32_v6  ;;  %v34_v11 = vld [vmem:[%s2934_s1 + $0x10] sm:$0xff]  ;;  %v2622_v14 = vld [vmem:[%s2934_s1 + $0x48] sm:$0xff]  ;;  %v27_v15 = vld [vmem:[%s2935_s0] sm:$0xff] }
   0x4   :  { %v38_v12 = vld [vmem:[%s2934_s1 + $0x30] sm:$0xff]  ;;  %v2630_v16 = vld [vmem:[%s2934_s1 + $0x58] sm:$0xff]  ;;  %v2636_v17 = vld [vmem:[%s2934_s1 + $0x40] sm:$0xff]  ;;  %v2694_v26 = vsub.s32 0, %v2691_v25  ;;  %v2700_v28 = vsub.s32 1, %v2691_v25  ;;  %v2706_v30 = vsub.s32 3, %v2691_v25 }
   0x5   :  { %2365 = vmatprep.subr.bf16.mxu0 %v2364_v4  ;;  %v2370_v13 = vpack.c.bf16 %v38_v12, %v34_v11  ;;  %2369 = vmatprep.subr.bf16.mxu1 %v2368_v9  ;;  %v16_v18 = vld [vmem:[%s2935_s0 + $0x30] sm:$0xff]  ;;  %v28_v20 = vld [vmem:[%s2935_s0 + $0x8] sm:$0xff]  ;;  %v30_v22 = vld [vmem:[%s2935_s0 + $0x18] sm:$0xff]  ;;  %v2716_v37 = vsub.s32 2, %v2691_v25  ;;  %vm1472_vm7 = vcmp.eq.s32.totalorder %v2691_v25, 0  ;;  %vm1660_vm8 = vcmp.eq.s32.totalorder %v2691_v25, 1 }
   0x6   :  { %2367 = vmatpush1.bf16.msra.mxu0 %v2366_v10  ;;  %19 = vperm.xlu0 %2468, %v16_v18   ;;  %v2646_v19 = vld [vmem:[%s2934_s1 + $0x50] sm:$0xff]  ;;  %v31_v23 = vld [vmem:[%s2935_s0 + $0x20] sm:$0xff]  ;;  %vm1849_vm9 = vcmp.eq.s32.totalorder %v2691_v25, 2  ;;  %vm2038_vm10 = vcmp.eq.s32.totalorder %v2691_v25, 3  ;;  %vm2227_vm12 = vcmp.eq.s32.totalorder %v2691_v25, 4 }
   0x7   :  { %2371 = vmatpush1.bf16.msra.mxu1 %v2370_v13  ;;  %275 = vmatprep.subr.mxu0 %v2622_v14  ;;  %v29_v21 = vld [vmem:[%s2935_s0 + $0x10] sm:$0xff] }
   0x8   :  { %346 = vmatprep.subr.mxu1 %v2630_v16  ;;  %v2323_v27 = vld [vmem:[%s2934_s1 + $0x120] ss:$8 sm:$0xf] }
   0x9   :  { %2325 = vmatmul.mubr.msk.f32.vlgmr.msra.gmra.mrb[0].mxu0 %vm61_vm0, %v27_v15  ;;  %v2703_v29 = vrot.slane %v2323_v27, %v2694_v26  ;;  %v2709_v31 = vrot.slane %v2323_v27, %v2700_v28  ;;  %v2713_v36 = vrot.slane %v2323_v27, %v2706_v30  ;;  %v2721_v43 = vrot.slane %v2323_v27, %v2716_v37 }
   0xa   :  { %2330 = vmatmul.mubr.msk.f32.vlgmr.msra.gmra.mrb[0].mxu1 %vm61_vm0, %v27_v15  ;;  %276 = vmatpush1.msra.mxu0 %v2636_v17 }
   0xb   :  { %147 = vmatprep.mubr.f32.mxu0 %v2573_v3  ;;  %242 = vmatprep.mubr.f32.mxu1 %v2573_v3 }
   0xc   :  { %347 = vmatpush1.msra.mxu1 %v2646_v19  ;;  %444 = vmatprep.subr.mxu0 %v2622_v14 }
   0xd   :  { %2326 = vmatmul.mubr.msk.f32.gmra.mrb[2].mxu0 %vm61_vm0, %v28_v20  ;;  %515 = vmatprep.subr.mxu1 %v2630_v16 }
   0xe   :  { %2331 = vmatmul.mubr.msk.f32.gmra.mrb[2].mxu1 %vm61_vm0, %v28_v20  ;;  %153 = vmatprep.mubr.f32.mxu0 %v2573_v3 }
   0xf   :  { %248 = vmatprep.mubr.f32.mxu1 %v2573_v3 }
  0x11   :  { %2327 = vmatmul.mubr.msk.f32.gmra.mrb[4].mxu0 %vm61_vm0, %v29_v21 }
  0x12   :  { %2332 = vmatmul.mubr.msk.f32.gmra.mrb[4].mxu1 %vm61_vm0, %v29_v21  ;;  %159 = vmatprep.mubr.f32.mxu0 %v2573_v3 }
  0x13   :  { %254 = vmatprep.mubr.f32.mxu1 %v2573_v3 }
  0x15   :  { %2328 = vmatmul.mubr.msk.f32.gmra.mrb[6].mxu0 %vm61_vm0, %v30_v22 }
  0x16   :  { %2333 = vmatmul.mubr.msk.f32.gmra.mrb[6].mxu1 %vm61_vm0, %v30_v22  ;;  %165 = vmatprep.mubr.f32.mxu0 %v2573_v3 }
  0x17   :  { %260 = vmatprep.mubr.f32.mxu1 %v2573_v3 }
  0x19   :  { %2329 = vmatmul.mubr.msk.f32.gmra.mrb[8].mxu0 %vm61_vm0, %v31_v23 }
  0x1a   :  { %2334 = vmatmul.mubr.msk.f32.gmra.mrb[8].mxu1 %vm61_vm0, %v31_v23  ;;  %339 = vmatprep.mubr.f32.mxu0 %v2573_v3 }
  0x1b   :  { %410 = vmatprep.mubr.f32.mxu1 %v2573_v3 }
  0x1d   :  { %340 = vmatmul.mubr.f32.vlgmr.msra.gmra.mrb[0].mxu0 %v2573_v3 }
  0x1e   :  { %411 = vmatmul.mubr.f32.vlgmr.msra.gmra.mrb[0].mxu1 %v2573_v3  ;;  %445 = vmatpush1.msra.mxu0 %v2636_v17 }
  0x1f   :  { %508 = vmatprep.mubr.f32.mxu0 %v2573_v3  ;;  %516 = vmatpush1.msra.mxu1 %v2646_v19 }
  0x20   :  { %579 = vmatprep.mubr.f32.mxu1 %v2573_v3  ;;  %613 = vmatprep.subr.mxu0 %v2622_v14 }
  0x21   :  { %684 = vmatprep.subr.mxu1 %v2630_v16 }
  0x85   :  { %v2724_v54 = vpop.permute.xlu0 %19 }
  0x86   :  { %vm22_vm1 = vcmp.gt.f32.partialorder %v2724_v54, 0.0  ;;  %vm23_vm3 = vcmp.gt.f32.partialorder %v2724_v54, 1.0  ;;  %vm24_vm4 = vcmp.gt.f32.partialorder %v2724_v54, 2.0  ;;  %vm25_vm5 = vcmp.gt.f32.partialorder %v2724_v54, 3.0 }
  0x87   :  { %vm26_vm6 = vcmp.gt.f32.partialorder %v2724_v54, 4.0  ;;  %v1116_v54 = vld [vmem:[%s2935_s0 + $0x28] sm:$0xff] }
  0xf0   :  { %v341_v32 = vpop.f32.mrb[0].mxu0 }
  0xf1   :  { %v2423_v33 = vadd.f32 %v341_v32, %v2703_v29  ;;  %v412_v34 = vpop.f32.mrb[0].mxu1  ;;  %v343_v35 = vpop.f32.mrb[1].mxu0 }
  0xf2   :  { %v2424_v38 = vadd.f32 %v343_v35, %v2709_v31  ;;  %v414_v39 = vpop.f32.mrb[1].mxu1  ;;  %v2433_v44 = vadd.f32 %v412_v34, %v2721_v43 }
  0xf3   :  { %v421_v40 = vmul.f32 0.5, %v2423_v33  ;;  %v2434_v42 = vadd.f32 %v414_v39, %v2713_v36 }
  0xf4   :  { %v422_v41 = vmul.f32 0.5, %v2424_v38  ;;  %v423_v45 = vmul.f32 0.5, %v2433_v44 }
  0xf5   :  { %2469 = vtanh.f32 %v421_v40 }
  0xf6   :  { %2471 = vtanh.f32 %v422_v41 }
  0xf7   :  { %2473 = vtanh.f32 %v2434_v42 }
  0xf8   :  { %2475 = vtanh.f32 %v423_v45 }
  0xff   :  { %v2470_v46 = vpop.eup %2469 }
 0x100   :  { %v427_v47 = vmul.f32 0.5, %v2470_v46  ;;  %v2472_v48 = vpop.eup %2471 }
 0x101   :  { %v428_v50 = vmul.f32 0.5, %v2472_v48  ;;  %v2474_v51 = vpop.eup %2473 }
 0x102   :  { %v430_v49 = vadd.f32 0.5, %v427_v47  ;;  %v2476_v58 = vpop.eup %2475 }
 0x103   :  { %v431_v52 = vadd.f32 0.5, %v428_v50  ;;  %v429_v59 = vmul.f32 0.5, %v2476_v58 }
 0x104   :  { %v435_v53 = vmul.f32 %v2474_v51, %v430_v49 }
 0x105   :  { %v434_v55 = vmul.f32 0.0, %v431_v52  ;;  %v432_v60 = vadd.f32 0.5, %v429_v59 }
 0x107   :  { %v436_v56 = vadd.f32 %v435_v53, %v434_v55 }
 0x109   :  { %2477 = vtanh.f32 %v436_v56  ;;  %v440_v57 = vsel %vm22_vm1, %v436_v56, 0.0 }
 0x113   :  { %v2478_v61 = vpop.eup %2477 }
 0x114   :  { %v438_v62 = vmul.f32 %v2478_v61, %v432_v60 }
 0x116   :  { %v439_v63 = vsel %vm22_vm1, %v438_v62, 0.0 }
 0x117   :  { %2335 = vmatmul.mubr.msk.f32.vlgmr.msra.gmra.mrb[2].mxu0 %vm271_vm2, %v439_v63  ;;  %2336 = vmatmul.mubr.msk.f32.vlgmr.msra.gmra.mrb[2].mxu1 %vm271_vm2, %v439_v63 }
 0x118   :  { %614 = vmatpush1.msra.mxu0 %v2636_v17  ;;  %677 = vmatprep.mubr.f32.mxu0 %v2573_v3 }
 0x119   :  { %685 = vmatpush1.msra.mxu1 %v2646_v19  ;;  %748 = vmatprep.mubr.f32.mxu1 %v2573_v3 }
 0x11a   :  { %782 = vmatprep.subr.mxu0 %v2622_v14  ;;  %853 = vmatprep.subr.mxu1 %v2630_v16 }
 0x1ea   :  { %v510_v0 = vpop.f32.mrb[2].mxu0  ;;  %v581_v1 = vpop.f32.mrb[2].mxu1 }
 0x1eb   :  { %v2425_v2 = vadd.f32 %v510_v0, %v2703_v29  ;;  %v512_v4 = vpop.f32.mrb[3].mxu0  ;;  %v583_v5 = vpop.f32.mrb[3].mxu1  ;;  %v2435_v10 = vadd.f32 %v581_v1, %v2721_v43 }
 0x1ec   :  { %v2426_v6 = vadd.f32 %v512_v4, %v2709_v31  ;;  %v2436_v9 = vadd.f32 %v583_v5, %v2713_v36 }
 0x1ed   :  { %v590_v7 = vmul.f32 0.5, %v2425_v2  ;;  %v592_v11 = vmul.f32 0.5, %v2435_v10 }
 0x1ee   :  { %v591_v8 = vmul.f32 0.5, %v2426_v6 }
 0x1ef   :  { %2479 = vtanh.f32 %v590_v7 }
 0x1f0   :  { %2481 = vtanh.f32 %v591_v8 }
 0x1f1   :  { %2483 = vtanh.f32 %v2436_v9 }
 0x1f2   :  { %2485 = vtanh.f32 %v592_v11 }
 0x1f9   :  { %v2480_v12 = vpop.eup %2479 }
 0x1fa   :  { %v596_v13 = vmul.f32 0.5, %v2480_v12  ;;  %v2482_v15 = vpop.eup %2481 }
 0x1fb   :  { %v597_v20 = vmul.f32 0.5, %v2482_v15  ;;  %v2484_v21 = vpop.eup %2483 }
 0x1fc   :  { %v599_v18 = vadd.f32 0.5, %v596_v13  ;;  %v2486_v33 = vpop.eup %2485 }
 0x1fd   :  { %v600_v22 = vadd.f32 0.5, %v597_v20  ;;  %v598_v34 = vmul.f32 0.5, %v2486_v33 }
 0x1fe   :  { %v604_v23 = vmul.f32 %v2484_v21, %v599_v18 }
 0x1ff   :  { %v603_v24 = vmul.f32 %v600_v22, %v440_v57  ;;  %v601_v35 = vadd.f32 0.5, %v598_v34 }
 0x201   :  { %v605_v27 = vadd.f32 %v604_v23, %v603_v24 }
 0x203   :  { %2487 = vtanh.f32 %v605_v27  ;;  %v609_v32 = vsel %vm23_vm3, %v605_v27, %v440_v57 }
 0x20d   :  { %v2488_v38 = vpop.eup %2487 }
 0x20e   :  { %v607_v39 = vmul.f32 %v2488_v38, %v601_v35 }
 0x210   :  { %v608_v40 = vsel %vm23_vm3, %v607_v39, %v439_v63 }
 0x211   :  { %2337 = vmatmul.mubr.msk.f32.vlgmr.msra.gmra.mrb[4].mxu0 %vm271_vm2, %v608_v40  ;;  %2338 = vmatmul.mubr.msk.f32.vlgmr.msra.gmra.mrb[4].mxu1 %vm271_vm2, %v608_v40 }
 0x212   :  { %783 = vmatpush1.msra.mxu0 %v2636_v17  ;;  %846 = vmatprep.mubr.f32.mxu0 %v2573_v3 }
 0x213   :  { %854 = vmatpush1.msra.mxu1 %v2646_v19  ;;  %917 = vmatprep.mubr.f32.mxu1 %v2573_v3 }
 0x214   :  { %951 = vmatprep.subr.mxu0 %v2622_v14  ;;  %1022 = vmatprep.subr.mxu1 %v2630_v16 }
 0x2e4   :  { %v679_v41 = vpop.f32.mrb[4].mxu0  ;;  %v750_v42 = vpop.f32.mrb[4].mxu1 }
 0x2e5   :  { %v2427_v44 = vadd.f32 %v679_v41, %v2703_v29  ;;  %v681_v45 = vpop.f32.mrb[5].mxu0  ;;  %v752_v46 = vpop.f32.mrb[5].mxu1  ;;  %v2437_v51 = vadd.f32 %v750_v42, %v2721_v43 }
 0x2e6   :  { %v2428_v47 = vadd.f32 %v681_v45, %v2709_v31  ;;  %v2438_v50 = vadd.f32 %v752_v46, %v2713_v36  ;;  %v1123_v45 = vld [vmem:[%s2934_s1 + $0x68] sm:$0xff] }
 0x2e7   :  { %v759_v48 = vmul.f32 0.5, %v2427_v44  ;;  %v761_v14 = vmul.f32 0.5, %v2437_v51  ;;  %v1127_v46 = vld [vmem:[%s2934_s1 + $0x88] sm:$0xff]  ;;  %v1126_v51 = vld [vmem:[%s2934_s1 + $0x80] sm:$0xff] }
 0x2e8   :  { %v760_v49 = vmul.f32 0.5, %v2428_v47  ;;  %v1125_v47 = vld [vmem:[%s2934_s1 + $0x78] sm:$0xff] }
 0x2e9   :  { %2489 = vtanh.f32 %v759_v48  ;;  %v2372_v48 = vpack.c.bf16 %v1127_v46, %v1123_v45 }
 0x2ea   :  { %2491 = vtanh.f32 %v760_v49  ;;  %v1129_v49 = vld [vmem:[%s2934_s1 + $0x98] sm:$0xff] }
 0x2eb   :  { %2493 = vtanh.f32 %v2438_v50  ;;  %v1122_v50 = vld [vmem:[%s2934_s1 + $0x60] sm:$0xff] }
 0x2ec   :  { %2495 = vtanh.f32 %v761_v14  ;;  %v2376_v14 = vpack.c.bf16 %v1129_v49, %v1125_v47 }
 0x2f3   :  { %v2490_v52 = vpop.eup %2489 }
 0x2f4   :  { %v765_v16 = vmul.f32 0.5, %v2490_v52  ;;  %v2492_v53 = vpop.eup %2491  ;;  %v2374_v52 = vpack.c.bf16 %v1126_v51, %v1122_v50 }
 0x2f5   :  { %v766_v56 = vmul.f32 0.5, %v2492_v53  ;;  %v2494_v57 = vpop.eup %2493  ;;  %v1128_v53 = vld [vmem:[%s2934_s1 + $0x90] sm:$0xff] }
 0x2f6   :  { %v768_v55 = vadd.f32 0.5, %v765_v16  ;;  %v2496_v63 = vpop.eup %2495  ;;  %v1124_v16 = vld [vmem:[%s2934_s1 + $0x70] sm:$0xff] }
 0x2f7   :  { %v769_v58 = vadd.f32 0.5, %v766_v56  ;;  %v767_v0 = vmul.f32 0.5, %v2496_v63 }
 0x2f8   :  { %v773_v59 = vmul.f32 %v2494_v57, %v768_v55  ;;  %v2378_v55 = vpack.c.bf16 %v1128_v53, %v1124_v16 }
 0x2f9   :  { %v772_v60 = vmul.f32 %v769_v58, %v609_v32  ;;  %v770_v1 = vadd.f32 0.5, %v767_v0 }
 0x2fb   :  { %v774_v61 = vadd.f32 %v773_v59, %v772_v60 }
 0x2fd   :  { %2497 = vtanh.f32 %v774_v61  ;;  %v778_v62 = vsel %vm24_vm4, %v774_v61, %v609_v32 }
 0x307   :  { %v2498_v2 = vpop.eup %2497 }
 0x308   :  { %v776_v4 = vmul.f32 %v2498_v2, %v770_v1 }
 0x30a   :  { %v777_v5 = vsel %vm24_vm4, %v776_v4, %v608_v40 }
 0x30b   :  { %2339 = vmatmul.mubr.msk.f32.vlgmr.msra.gmra.mrb[6].mxu0 %vm271_vm2, %v777_v5  ;;  %2340 = vmatmul.mubr.msk.f32.vlgmr.msra.gmra.mrb[6].mxu1 %vm271_vm2, %v777_v5 }
 0x30c   :  { %952 = vmatpush1.msra.mxu0 %v2636_v17  ;;  %1015 = vmatprep.mubr.f32.mxu0 %v2573_v3 }
 0x30d   :  { %1023 = vmatpush1.msra.mxu1 %v2646_v19  ;;  %1086 = vmatprep.mubr.f32.mxu1 %v2573_v3 }
 0x30e   :  { %2373 = vmatprep.subr.bf16.mxu0 %v2372_v48  ;;  %2377 = vmatprep.subr.bf16.mxu1 %v2376_v14 }
 0x3de   :  { %v848_v6 = vpop.f32.mrb[6].mxu0  ;;  %v919_v7 = vpop.f32.mrb[6].mxu1 }
 0x3df   :  { %v2429_v8 = vadd.f32 %v848_v6, %v2703_v29  ;;  %v850_v9 = vpop.f32.mrb[7].mxu0  ;;  %v921_v10 = vpop.f32.mrb[7].mxu1  ;;  %v2439_v17 = vadd.f32 %v919_v7, %v2721_v43 }
 0x3e0   :  { %v2430_v11 = vadd.f32 %v850_v9, %v2709_v31  ;;  %v2440_v15 = vadd.f32 %v921_v10, %v2713_v36 }
 0x3e1   :  { %v928_v12 = vmul.f32 0.5, %v2429_v8  ;;  %v930_v19 = vmul.f32 0.5, %v2439_v17 }
 0x3e2   :  { %v929_v13 = vmul.f32 0.5, %v2430_v11 }
 0x3e3   :  { %2499 = vtanh.f32 %v928_v12  ;;  %v1301_v12 = vld [vmem:[%s2934_s1 + $0xb8] sm:$0xff] }
 0x3e4   :  { %2501 = vtanh.f32 %v929_v13 }
 0x3e5   :  { %2503 = vtanh.f32 %v2440_v15  ;;  %v1305_v15 = vld [vmem:[%s2934_s1 + $0xd8] sm:$0xff] }
 0x3e6   :  { %2505 = vtanh.f32 %v930_v19  ;;  %v2810_v17 = vpack.c.bf16 %v1305_v15, %v1301_v12 }
 0x3ed   :  { %v2500_v18 = vpop.eup %2499 }
 0x3ee   :  { %v934_v20 = vmul.f32 0.5, %v2500_v18  ;;  %v2502_v21 = vpop.eup %2501 }
 0x3ef   :  { %v935_v23 = vmul.f32 0.5, %v2502_v21  ;;  %v2504_v24 = vpop.eup %2503 }
 0x3f0   :  { %v937_v22 = vadd.f32 0.5, %v934_v20  ;;  %v2506_v38 = vpop.eup %2505 }
 0x3f1   :  { %v938_v27 = vadd.f32 0.5, %v935_v23  ;;  %v936_v39 = vmul.f32 0.5, %v2506_v38 }
 0x3f2   :  { %v942_v32 = vmul.f32 %v2504_v24, %v937_v22  ;;  %v1298_v24 = vld [vmem:[%s2934_s1 + $0xa0] sm:$0xff] }
 0x3f3   :  { %v941_v33 = vmul.f32 %v938_v27, %v778_v62  ;;  %v939_v40 = vadd.f32 0.5, %v936_v39  ;;  %v1302_v27 = vld [vmem:[%s2934_s1 + $0xc0] sm:$0xff] }
 0x3f5   :  { %v943_v34 = vadd.f32 %v942_v32, %v941_v33  ;;  %v1300_v32 = vld [vmem:[%s2934_s1 + $0xb0] sm:$0xff] }
 0x3f6   :  { %v1304_v33 = vld [vmem:[%s2934_s1 + $0xd0] sm:$0xff] }
 0x3f7   :  { %2507 = vtanh.f32 %v943_v34  ;;  %v947_v35 = vsel %vm25_vm5, %v943_v34, %v778_v62  ;;  %v2830_v34 = vpack.c.bf16 %v1302_v27, %v1298_v24 }
 0x401   :  { %v2508_v41 = vpop.eup %2507 }
 0x402   :  { %v945_v42 = vmul.f32 %v2508_v41, %v939_v40  ;;  %v2324_v40 = vld [vmem:[%s2934_s1 + $0x121] ss:$8 sm:$0xf] }
 0x403   :  { %v1134_v41 = vrot.slane %v2324_v40, %v2694_v26  ;;  %v1138_v45 = vrot.slane %v2324_v40, %v2700_v28  ;;  %v1146_v49 = vrot.slane %v2324_v40, %v2706_v30 }
 0x404   :  { %v946_v44 = vsel %vm25_vm5, %v945_v42, %v777_v5 }
 0x405   :  { %2341 = vmatmul.mubr.msk.f32.vlgmr.msra.gmra.mrb[8].mxu0 %vm271_vm2, %v946_v44  ;;  %2342 = vmatmul.mubr.msk.f32.vlgmr.msra.gmra.mrb[8].mxu1 %vm271_vm2, %v946_v44 }
 0x406   :  { %1218 = vmatprep.mubr.f32.mxu0 %v2573_v3  ;;  %1289 = vmatprep.mubr.f32.mxu1 %v2573_v3 }
 0x407   :  { %2375 = vmatpush1.bf16.msra.mxu0 %v2374_v52  ;;  %2379 = vmatpush1.bf16.msra.mxu1 %v2378_v55 }
 0x408   :  { %2385 = vmatprep.subr.bf16.mxu1 %v2810_v17 }
 0x4d8   :  { %v1017_v56 = vpop.f32.mrb[8].mxu0  ;;  %v1088_v57 = vpop.f32.mrb[8].mxu1 }
 0x4d9   :  { %v2431_v58 = vadd.f32 %v1017_v56, %v2703_v29  ;;  %v1019_v59 = vpop.f32.mrb[9].mxu0  ;;  %v1090_v60 = vpop.f32.mrb[9].mxu1  ;;  %v2441_v1 = vadd.f32 %v1088_v57, %v2721_v43  ;;  %v1303_v43 = vld [vmem:[%s2934_s1 + $0xc8] sm:$0xff] }
 0x4da   :  { %v2432_v61 = vadd.f32 %v1019_v59, %v2709_v31  ;;  %v2442_v0 = vadd.f32 %v1090_v60, %v2713_v36  ;;  %v1299_v36 = vld [vmem:[%s2934_s1 + $0xa8] sm:$0xff] }
 0x4db   :  { %v1097_v62 = vmul.f32 0.5, %v2431_v58  ;;  %v1099_v2 = vmul.f32 0.5, %v2441_v1  ;;  %v2805_v13 = vpack.c.bf16 %v1303_v43, %v1299_v36  ;;  %v1142_v58 = vrot.slane %v2324_v40, %v2716_v37 }
 0x4dc   :  { %v1098_v63 = vmul.f32 0.5, %v2432_v61 }
 0x4dd   :  { %2509 = vtanh.f32 %v1097_v62  ;;  %2381 = vmatprep.subr.bf16.mxu0 %v2805_v13 }
 0x4de   :  { %2511 = vtanh.f32 %v1098_v63 }
 0x4df   :  { %2513 = vtanh.f32 %v2442_v0 }
 0x4e0   :  { %2515 = vtanh.f32 %v1099_v2 }
 0x4e7   :  { %v2510_v4 = vpop.eup %2509 }
 0x4e8   :  { %v1103_v5 = vmul.f32 0.5, %v2510_v4  ;;  %v2512_v6 = vpop.eup %2511 }
 0x4e9   :  { %v1104_v29 = vmul.f32 0.5, %v2512_v6  ;;  %v2514_v8 = vpop.eup %2513 }
 0x4ea   :  { %v1106_v7 = vadd.f32 0.5, %v1103_v5  ;;  %v2516_v19 = vpop.eup %2515 }
 0x4eb   :  { %v1107_v9 = vadd.f32 0.5, %v1104_v29  ;;  %v1105_v18 = vmul.f32 0.5, %v2516_v19 }
 0x4ec   :  { %v1111_v10 = vmul.f32 %v2514_v8, %v1106_v7 }
 0x4ed   :  { %v1110_v31 = vmul.f32 %v1107_v9, %v947_v35  ;;  %v1108_v20 = vadd.f32 0.5, %v1105_v18  ;;  %v2832_v35 = vpack.c.bf16 %v1304_v33, %v1300_v32 }
 0x4ef   :  { %v1112_v11 = vadd.f32 %v1111_v10, %v1110_v31 }
 0x4f1   :  { %2517 = vtanh.f32 %v1112_v11 }
 0x4fb   :  { %v2518_v21 = vpop.eup %2517 }
 0x4fc   :  { %v1114_v22 = vmul.f32 %v2518_v21, %v1108_v20 }
 0x4fe   :  { %v1115_v23 = vsel %vm26_vm6, %v1114_v22, %v946_v44 }
 0x4ff   :  { %1118 = vrot.lane.b32.xlu0 %v1115_v23, %s2575_s15 }
 0x571   :  { %v1119_v38 = vpop.permute.xlu0 %1118 }
 0x572   :  { %v1121_v39 = vsel %vm271_vm2, %v1116_v54, %v1119_v38 }
 0x573   :  { %2343 = vmatmul.mubr.msk.f32.vlgmr.msra.gmra.mrb[10].mxu0 %vm61_vm0, %v1121_v39  ;;  %2344 = vmatmul.mubr.msk.f32.vlgmr.msra.gmra.mrb[10].mxu1 %vm61_vm0, %v1121_v39 }
 0x574   :  { %2383 = vmatpush1.bf16.msra.mxu0 %v2830_v34  ;;  %2387 = vmatpush1.bf16.msra.mxu1 %v2832_v35 }
 0x575   :  { %1372 = vmatprep.mubr.f32.mxu0 %v2573_v3  ;;  %1443 = vmatprep.mubr.f32.mxu1 %v2573_v3 }
 0x576   :  { %2389 = vmatprep.subr.bf16.mxu0 %v2805_v13  ;;  %2393 = vmatprep.subr.bf16.mxu1 %v2810_v17 }
 0x577   :  { %1373 = vmatmul.mubr.f32.vlgmr.msra.gmra.mrb[12].mxu0 %v2573_v3  ;;  %1444 = vmatmul.mubr.f32.vlgmr.msra.gmra.mrb[12].mxu1 %v2573_v3 }
 0x578   :  { %2391 = vmatpush1.bf16.msra.mxu0 %v2830_v34  ;;  %2395 = vmatpush1.bf16.msra.mxu1 %v2832_v35 }
 0x579   :  { %1545 = vmatprep.mubr.f32.mxu0 %v2573_v3  ;;  %1616 = vmatprep.mubr.f32.mxu1 %v2573_v3 }
 0x57a   :  { %2397 = vmatprep.subr.bf16.mxu0 %v2805_v13  ;;  %2401 = vmatprep.subr.bf16.mxu1 %v2810_v17 }
 0x646   :  { %v1220_v42 = vpop.f32.mrb[10].mxu0  ;;  %v1291_v44 = vpop.f32.mrb[10].mxu1 }
 0x647   :  { %v1222_v46 = vpop.f32.mrb[11].mxu0  ;;  %v1293_v47 = vpop.f32.mrb[11].mxu1  ;;  %v2856_v48 = vadd.f32 %v1220_v42, %v1134_v41  ;;  %v2867_v61 = vadd.f32 %v1291_v44, %v1142_v58 }
 0x648   :  { %v2859_v50 = vadd.f32 %v1222_v46, %v1138_v45  ;;  %v2863_v56 = vadd.f32 %v1293_v47, %v1146_v49 }
 0x64a   :  { %v1374_v51 = vpop.f32.mrb[12].mxu0  ;;  %v1445_v14 = vpop.f32.mrb[12].mxu1 }
 0x64b   :  { %v1450_v52 = vadd.f32 %v1374_v51, %v2856_v48  ;;  %v1376_v16 = vpop.f32.mrb[13].mxu0  ;;  %v1447_v53 = vpop.f32.mrb[13].mxu1  ;;  %v1452_v62 = vadd.f32 %v1445_v14, %v2867_v61 }
 0x64c   :  { %v1451_v55 = vadd.f32 %v1376_v16, %v2859_v50  ;;  %v1453_v60 = vadd.f32 %v1447_v53, %v2863_v56 }
 0x64d   :  { %v1454_v57 = vmul.f32 0.5, %v1450_v52  ;;  %v1456_v63 = vmul.f32 0.5, %v1452_v62 }
 0x64e   :  { %v1455_v59 = vmul.f32 0.5, %v1451_v55 }
 0x64f   :  { %2519 = vtanh.f32 %v1454_v57 }
 0x650   :  { %2521 = vtanh.f32 %v1455_v59 }
 0x651   :  { %2523 = vtanh.f32 %v1453_v60 }
 0x652   :  { %2525 = vtanh.f32 %v1456_v63 }
 0x659   :  { %v2520_v0 = vpop.eup %2519 }
 0x65a   :  { %v1460_v1 = vmul.f32 0.5, %v2520_v0  ;;  %v2522_v2 = vpop.eup %2521 }
 0x65b   :  { %v1461_v5 = vmul.f32 0.5, %v2522_v2  ;;  %v2524_v6 = vpop.eup %2523 }
 0x65c   :  { %v1463_v4 = vadd.f32 0.5, %v1460_v1  ;;  %v2526_v10 = vpop.eup %2525 }
 0x65d   :  { %v1464_v7 = vadd.f32 0.5, %v1461_v5  ;;  %v1462_v31 = vmul.f32 0.5, %v2526_v10 }
 0x65e   :  { %v1468_v29 = vmul.f32 %v2524_v6, %v1463_v4 }
 0x65f   :  { %v1467_v8 = vmul.f32 0.0, %v1464_v7  ;;  %v1465_v11 = vadd.f32 0.5, %v1462_v31 }
 0x661   :  { %v1469_v9 = vadd.f32 %v1468_v29, %v1467_v8 }
 0x663   :  { %2527 = vtanh.f32 %v1469_v9  ;;  %v1653_v49 = vrot.slane %v1469_v9, 7 }
 0x66d   :  { %v2528_v36 = vpop.eup %2527 }
 0x66e   :  { %v1471_v43 = vmul.f32 %v2528_v36, %v1465_v11 }
 0x670   :  { %2345 = vmatmul.mubr.msk.f32.vlgmr.msra.gmra.mrb[14].mxu0 %vm61_vm0, %v1471_v43  ;;  %2346 = vmatmul.mubr.msk.f32.vlgmr.msra.gmra.mrb[14].mxu1 %vm61_vm0, %v1471_v43  ;;  %v1476_v58 = vrot.slane %v1471_v43, %v2694_v26 }
 0x671   :  { %2399 = vmatpush1.bf16.msra.mxu0 %v2830_v34  ;;  %2403 = vmatpush1.bf16.msra.mxu1 %v2832_v35 }
 0x672   :  { %1734 = vmatprep.mubr.f32.mxu0 %v2573_v3  ;;  %1805 = vmatprep.mubr.f32.mxu1 %v2573_v3  ;;  %v1477_v63 = vsel %vm1472_vm7, %v1476_v58, 0.0 }
 0x673   :  { %2405 = vmatprep.subr.bf16.mxu0 %v2805_v13  ;;  %2409 = vmatprep.subr.bf16.mxu1 %v2810_v17 }
 0x743   :  { %v1547_v12 = vpop.f32.mrb[14].mxu0  ;;  %v1618_v15 = vpop.f32.mrb[14].mxu1 }
 0x744   :  { %v1627_v19 = vrot.slane %v1547_v12, 7  ;;  %v1549_v18 = vpop.f32.mrb[15].mxu0  ;;  %v1620_v20 = vpop.f32.mrb[15].mxu1  ;;  %v1629_v54 = vrot.slane %v1618_v15, 7 }
 0x745   :  { %v1628_v21 = vrot.slane %v1549_v18, 7  ;;  %v1630_v23 = vrot.slane %v1620_v20, 7 }
 0x746   :  { %v1635_v22 = vadd.f32 %v1627_v19, %v2856_v48  ;;  %v1637_v38 = vadd.f32 %v1629_v54, %v2867_v61 }
 0x747   :  { %v1636_v24 = vadd.f32 %v1628_v21, %v2859_v50  ;;  %v1638_v33 = vadd.f32 %v1630_v23, %v2863_v56 }
 0x748   :  { %v1639_v27 = vmul.f32 0.5, %v1635_v22  ;;  %v1641_v39 = vmul.f32 0.5, %v1637_v38 }
 0x749   :  { %v1640_v32 = vmul.f32 0.5, %v1636_v24 }
 0x74a   :  { %2529 = vtanh.f32 %v1639_v27 }
 0x74b   :  { %2531 = vtanh.f32 %v1640_v32 }
 0x74c   :  { %2533 = vtanh.f32 %v1638_v33 }
 0x74d   :  { %2535 = vtanh.f32 %v1641_v39 }
 0x754   :  { %v2530_v40 = vpop.eup %2529 }
 0x755   :  { %v1645_v41 = vmul.f32 0.5, %v2530_v40  ;;  %v2532_v42 = vpop.eup %2531 }
 0x756   :  { %v1646_v45 = vmul.f32 0.5, %v2532_v42  ;;  %v2534_v46 = vpop.eup %2533 }
 0x757   :  { %v1648_v44 = vadd.f32 0.5, %v1645_v41  ;;  %v2536_v16 = vpop.eup %2535 }
 0x758   :  { %v1649_v47 = vadd.f32 0.5, %v1646_v45  ;;  %v1647_v53 = vmul.f32 0.5, %v2536_v16 }
 0x759   :  { %v1656_v51 = vmul.f32 %v2534_v46, %v1648_v44 }
 0x75a   :  { %v1655_v14 = vmul.f32 %v1653_v49, %v1649_v47  ;;  %v1650_v55 = vadd.f32 0.5, %v1647_v53 }
 0x75c   :  { %v1657_v52 = vadd.f32 %v1656_v51, %v1655_v14 }
 0x75e   :  { %2537 = vtanh.f32 %v1657_v52  ;;  %v1842_v20 = vrot.slane %v1657_v52, 7 }
 0x768   :  { %v2538_v57 = vpop.eup %2537 }
 0x769   :  { %v1659_v59 = vmul.f32 %v2538_v57, %v1650_v55 }
 0x76b   :  { %v1664_v60 = vrot.slane %v1659_v59, %v2700_v28  ;;  %v1667_v62 = vrot.slane %v1659_v59, 1 }
 0x76d   :  { %2347 = vmatmul.mubr.msk.f32.vlgmr.msra.gmra.mrb[16].mxu0 %vm61_vm0, %v1667_v62  ;;  %2348 = vmatmul.mubr.msk.f32.vlgmr.msra.gmra.mrb[16].mxu1 %vm61_vm0, %v1667_v62  ;;  %v1665_v0 = vsel %vm1660_vm8, %v1664_v60, %v1477_v63 }
 0x76e   :  { %2407 = vmatpush1.bf16.msra.mxu0 %v2830_v34  ;;  %2411 = vmatpush1.bf16.msra.mxu1 %v2832_v35 }
 0x76f   :  { %1923 = vmatprep.mubr.f32.mxu0 %v2573_v3  ;;  %1994 = vmatprep.mubr.f32.mxu1 %v2573_v3 }
 0x770   :  { %2413 = vmatprep.subr.bf16.mxu0 %v2805_v13  ;;  %2417 = vmatprep.subr.bf16.mxu1 %v2810_v17 }
 0x840   :  { %v1736_v26 = vpop.f32.mrb[16].mxu0  ;;  %v1807_v28 = vpop.f32.mrb[16].mxu1 }
 0x841   :  { %v1816_v1 = vrot.slane %v1736_v26, 6  ;;  %v1738_v2 = vpop.f32.mrb[17].mxu0  ;;  %v1809_v4 = vpop.f32.mrb[17].mxu1  ;;  %v1818_v31 = vrot.slane %v1807_v28, 6 }
 0x842   :  { %v1817_v5 = vrot.slane %v1738_v2, 6  ;;  %v1819_v7 = vrot.slane %v1809_v4, 6 }
 0x843   :  { %v1824_v6 = vadd.f32 %v1816_v1, %v2856_v48  ;;  %v1826_v13 = vadd.f32 %v1818_v31, %v2867_v61  ;;  %v2234_v31 = vld [vmem:[%s2934_s1 + $0x100] sm:$0xff] }
 0x844   :  { %v1825_v29 = vadd.f32 %v1817_v5, %v2859_v50  ;;  %v1827_v10 = vadd.f32 %v1819_v7, %v2863_v56 }
 0x845   :  { %v1828_v8 = vmul.f32 0.5, %v1824_v6  ;;  %v1830_v17 = vmul.f32 0.5, %v1826_v13  ;;  %v2576_v13 = vmov 0.0|0.0  }
 0x846   :  { %v1829_v9 = vmul.f32 0.5, %v1825_v29 }
 0x847   :  { %2539 = vtanh.f32 %v1828_v8 }
 0x848   :  { %2541 = vtanh.f32 %v1829_v9 }
 0x849   :  { %2543 = vtanh.f32 %v1827_v10  ;;  %v2233_v10 = vld [vmem:[%s2934_s1 + $0xe0] sm:$0xff] }
 0x84a   :  { %2545 = vtanh.f32 %v1830_v17  ;;  %v2421_v17 = vpack.c.bf16 %v2234_v31, %v2233_v10 }
 0x851   :  { %v2540_v11 = vpop.eup %2539 }
 0x852   :  { %v1834_v36 = vmul.f32 0.5, %v2540_v11  ;;  %v2542_v43 = vpop.eup %2541 }
 0x853   :  { %v1835_v15 = vmul.f32 0.5, %v2542_v43  ;;  %v2544_v19 = vpop.eup %2543 }
 0x854   :  { %v1837_v12 = vadd.f32 0.5, %v1834_v36  ;;  %v2546_v24 = vpop.eup %2545 }
 0x855   :  { %v1838_v18 = vadd.f32 0.5, %v1835_v15  ;;  %v1836_v27 = vmul.f32 0.5, %v2546_v24 }
 0x856   :  { %v1845_v21 = vmul.f32 %v2544_v19, %v1837_v12 }
 0x857   :  { %v1844_v22 = vmul.f32 %v1842_v20, %v1838_v18  ;;  %v1839_v32 = vadd.f32 0.5, %v1836_v27 }
 0x859   :  { %v1846_v23 = vadd.f32 %v1845_v21, %v1844_v22 }
 0x85b   :  { %2547 = vtanh.f32 %v1846_v23 }
 0x865   :  { %v2548_v33 = vpop.eup %2547 }
 0x866   :  { %v1848_v54 = vmul.f32 %v2548_v33, %v1839_v32 }
 0x868   :  { %v1856_v38 = vrot.slane %v1848_v54, 2  ;;  %v1853_v39 = vrot.slane %v1848_v54, %v2716_v37 }
 0x86a   :  { %2349 = vmatmul.mubr.msk.f32.vlgmr.msra.gmra.mrb[18].mxu0 %vm61_vm0, %v1856_v38  ;;  %2350 = vmatmul.mubr.msk.f32.vlgmr.msra.gmra.mrb[18].mxu1 %vm61_vm0, %v1856_v38  ;;  %v1854_v40 = vsel %vm1849_vm9, %v1853_v39, %v1665_v0  ;;  %v2031_v0 = vrot.slane %v1846_v23, 7 }
 0x86b   :  { %2415 = vmatpush1.bf16.msra.mxu0 %v2830_v34  ;;  %2419 = vmatpush1.bf16.msra.mxu1 %v2832_v35 }
 0x86c   :  { %2112 = vmatprep.mubr.f32.mxu0 %v2573_v3  ;;  %2183 = vmatprep.mubr.f32.mxu1 %v2573_v3 }
 0x86d   :  { %2420 = vmatprep.subr.bf16.mxu0 %v2576_v13 }
 0x93d   :  { %v1925_v41 = vpop.f32.mrb[18].mxu0  ;;  %v1996_v42 = vpop.f32.mrb[18].mxu1 }
 0x93e   :  { %v2005_v44 = vrot.slane %v1925_v41, 5  ;;  %v1927_v45 = vpop.f32.mrb[19].mxu0  ;;  %v1998_v46 = vpop.f32.mrb[19].mxu1  ;;  %v2007_v35 = vrot.slane %v1996_v42, 5 }
 0x93f   :  { %v2006_v47 = vrot.slane %v1927_v45, 5  ;;  %v2008_v49 = vrot.slane %v1998_v46, 5 }
 0x940   :  { %v2013_v37 = vadd.f32 %v2005_v44, %v2856_v48  ;;  %v2015_v16 = vadd.f32 %v2007_v35, %v2867_v61 }
 0x941   :  { %v2014_v51 = vadd.f32 %v2006_v47, %v2859_v50  ;;  %v2016_v34 = vadd.f32 %v2008_v49, %v2863_v56  ;;  %v2230_v47 = vsub.s32 4, %v2691_v25 }
 0x942   :  { %v2017_v14 = vmul.f32 0.5, %v2013_v37  ;;  %v2019_v53 = vmul.f32 0.5, %v2015_v16 }
 0x943   :  { %v2018_v52 = vmul.f32 0.5, %v2014_v51 }
 0x944   :  { %2549 = vtanh.f32 %v2017_v14  ;;  %v15_v14 = vld [vmem:[%s2934_s1 + $0x122] ss:$0 sm:$0xff] }
 0x945   :  { %2551 = vtanh.f32 %v2018_v52 }
 0x946   :  { %2553 = vtanh.f32 %v2016_v34 }
 0x947   :  { %2555 = vtanh.f32 %v2019_v53 }
 0x94e   :  { %v2550_v55 = vpop.eup %2549 }
 0x94f   :  { %v2023_v57 = vmul.f32 0.5, %v2550_v55  ;;  %v2552_v58 = vpop.eup %2551 }
 0x950   :  { %v2024_v60 = vmul.f32 0.5, %v2552_v58  ;;  %v2554_v62 = vpop.eup %2553 }
 0x951   :  { %v2026_v59 = vadd.f32 0.5, %v2023_v57  ;;  %v2556_v2 = vpop.eup %2555 }
 0x952   :  { %v2027_v63 = vadd.f32 0.5, %v2024_v60  ;;  %v2025_v4 = vmul.f32 0.5, %v2556_v2 }
 0x953   :  { %v2034_v26 = vmul.f32 %v2554_v62, %v2026_v59 }
 0x954   :  { %v2033_v28 = vmul.f32 %v2031_v0, %v2027_v63  ;;  %v2028_v5 = vadd.f32 0.5, %v2025_v4 }
 0x956   :  { %v2035_v1 = vadd.f32 %v2034_v26, %v2033_v28 }
 0x958   :  { %2557 = vtanh.f32 %v2035_v1 }
 0x962   :  { %v2558_v6 = vpop.eup %2557 }
 0x963   :  { %v2037_v7 = vmul.f32 %v2558_v6, %v2028_v5 }
 0x965   :  { %v2045_v29 = vrot.slane %v2037_v7, 3  ;;  %v2042_v8 = vrot.slane %v2037_v7, %v2706_v30 }
 0x967   :  { %2351 = vmatmul.mubr.msk.f32.vlgmr.msra.gmra.mrb[20].mxu0 %vm61_vm0, %v2045_v29  ;;  %2352 = vmatmul.mubr.msk.f32.vlgmr.msra.gmra.mrb[20].mxu1 %vm61_vm0, %v2045_v29  ;;  %v2043_v9 = vsel %vm2038_vm10, %v2042_v8, %v1854_v40 }
 0x968   :  { %2361 = vmatprep.mubr.msk.f32.mxu0 %vm2577_vm11, %v2573_v3  ;;  %2422 = vmatpush3.bf16.msra.mxu0 %v2421_v17 }
 0xa3a   :  { %v2114_v30 = vpop.f32.mrb[20].mxu0  ;;  %v2185_v11 = vpop.f32.mrb[20].mxu1 }
 0xa3b   :  { %v2194_v36 = vrot.slane %v2114_v30, 4  ;;  %v2116_v43 = vpop.f32.mrb[21].mxu0  ;;  %v2187_v12 = vpop.f32.mrb[21].mxu1  ;;  %v2196_v24 = vrot.slane %v2185_v11, 4 }
 0xa3c   :  { %v2195_v15 = vrot.slane %v2116_v43, 4  ;;  %v2197_v18 = vrot.slane %v2187_v12, 4 }
 0xa3d   :  { %v2202_v19 = vadd.f32 %v2194_v36, %v2856_v48  ;;  %v2204_v3 = vadd.f32 %v2196_v24, %v2867_v61 }
 0xa3e   :  { %v2203_v20 = vadd.f32 %v2195_v15, %v2859_v50  ;;  %v2205_v23 = vadd.f32 %v2197_v18, %v2863_v56  ;;  %v2220_v50 = vrot.slane %v2035_v1, 7 }
 0xa3f   :  { %v2206_v21 = vmul.f32 0.5, %v2202_v19  ;;  %v2208_v27 = vmul.f32 0.5, %v2204_v3 }
 0xa40   :  { %v2207_v22 = vmul.f32 0.5, %v2203_v20 }
 0xa41   :  { %2559 = vtanh.f32 %v2206_v21 }
 0xa42   :  { %2561 = vtanh.f32 %v2207_v22 }
 0xa43   :  { %2563 = vtanh.f32 %v2205_v23 }
 0xa44   :  { %2565 = vtanh.f32 %v2208_v27 }
 0xa4b   :  { %v2560_v32 = vpop.eup %2559 }
 0xa4c   :  { %v2212_v33 = vmul.f32 0.5, %v2560_v32  ;;  %v2562_v54 = vpop.eup %2561 }
 0xa4d   :  { %v2213_v48 = vmul.f32 0.5, %v2562_v54  ;;  %v2564_v39 = vpop.eup %2563 }
 0xa4e   :  { %v2215_v38 = vadd.f32 0.5, %v2212_v33  ;;  %v2566_v56 = vpop.eup %2565 }
 0xa4f   :  { %v2216_v40 = vadd.f32 0.5, %v2213_v48  ;;  %v2214_v45 = vmul.f32 0.5, %v2566_v56 }
 0xa50   :  { %v2223_v41 = vmul.f32 %v2564_v39, %v2215_v38 }
 0xa51   :  { %v2222_v42 = vmul.f32 %v2220_v50, %v2216_v40  ;;  %v2217_v46 = vadd.f32 0.5, %v2214_v45 }
 0xa53   :  { %v2224_v44 = vadd.f32 %v2223_v41, %v2222_v42 }
 0xa55   :  { %2567 = vtanh.f32 %v2224_v44 }
 0xa5f   :  { %v2568_v61 = vpop.eup %2567 }
 0xa60   :  { %v2226_v37 = vmul.f32 %v2568_v61, %v2217_v46 }
 0xa62   :  { %v2231_v49 = vrot.slane %v2226_v37, %v2230_v47 }
 0xa64   :  { %v2232_v51 = vsel %vm2227_vm12, %v2231_v49, %v2043_v9 }
 0xa65   :  { %2362 = vmatmul.mubr.msk.f32.vlgmr.msra.gmra.mrb[22].mxu0 %vm61_vm0, %v2232_v51 }
 0xb38   :  { %v2304_v52 = vpop.f32.mrb[22].mxu0 }
 0xb39   :  { %v2305_v34 = vadd.f32 %v2304_v52, %v15_v14  ;;  %v2363_v35 = vpop.f32.mrb[23].mxu0 }
 0xb3b   :  { %2308 = vmax.xlane.f32.xlu1 %v2305_v34 }
 0xbc8   :  { %v2309_v16 = vpop.xlane.xlu1 %2308 }
 0xbc9   :  { %v2310_v53 = vsub.f32 %v2305_v34, %v2309_v16 }
 0xbcb   :  { %v2311_v55 = vmul.f32 1.442695, %v2310_v53 }
 0xbcd   :  { %2569 = vpow2.f32 %v2311_v55 }
 0xbd7   :  { %v2570_v57 = vpop.eup %2569 }
 0xbd8   :  { %2313 = vadd.xlane.f32.xlu1 %v2570_v57 }
 0xc65   :  { %v2314_v58 = vpop.xlane.xlu1 %2313 }
 0xc66   :  { %2571 = vlog2.f32 %v2314_v58 }
 0xc70   :  { %v2572_v25 = vpop.eup %2571 }
 0xc71   :  { %v2316_v59 = vmul.f32 0.6931472, %v2572_v25 }
 0xc73   :  { %v2317_v60 = vsub.f32 %v2310_v53, %v2316_v59 }
 0xc75   :  { %2318 = vst [vmem:[%s2936_s2] sm:$0xff] %v2317_v60 }

</bundles_post_ra>
